<compile_context>
chip_gen: v5e
topology: v5e:2x2
jax: 0.10.0
libtpu: 0.0.40
codegen_flags: <defaults>
</compile_context>

<pallas_src>
import functools
import math

import numpy as np
import jax
import jax.numpy as jnp
from jax.experimental import pallas as pl
from jax.experimental.pallas import tpu as pltpu


# ------------------------------ layout helpers ------------------------------- #
def _packing(C):
    """Number of image columns packed into one 128-lane row."""
    if C >= 128:
        assert C % 128 == 0, "channels must be a multiple of 128 when >= 128"
        return 1
    assert 128 % C == 0, "128 must be divisible by channels for lane packing"
    return 128 // C


def _vmem_budget_bytes():
    """~3/4 of this generation's VMEM (v5e/v6e 128 MiB, v7x 64 MiB per core)."""
    try:
        cap = int(pltpu.get_tpu_info().vmem_capacity_bytes)
    except Exception:
        cap = 64 << 20                      # conservative fallback (v7x per-core)
    return (3 * cap) // 4


def _pick_tile_rows(H, Wq, halo_rows, row_bytes, target_bytes):
    """Largest divisor of H (multiple of halo_rows) under the byte budget,
    preferring tiles whose packed-row count N=t*Wq fills MXU blocks (256/128)."""
    cands = [t for t in range(halo_rows, H + 1, halo_rows) if H % t == 0]
    if not cands:
        return H
    fits = [t for t in cands if t * row_bytes <= target_bytes]
    if not fits:
        return cands[0]
    for align in (256, 128):
        aligned = [t for t in fits if (t * Wq) % align == 0]
        if aligned:
            return max(aligned)
    return max(fits)


# ----------------------------- Pallas kernel -------------------------------- #
def _make_involution_kernel(tile_rows, W, C, K, Wpack, halo_rows):
    """Per-tile kernel body for one cross_involution layer."""
    pad = (K - 1) // 2
    Wq = W // Wpack                      # packed rows per image row
    L = Wpack * C                        # lane width of the packed layout (multiple of 128)
    LH = pad * C                         # lane halo (covers dx in [-pad, pad])
    OFF = ((LH + 127) // 128) * 128      # lane-aligned start of the data region
    EW = OFF + L + LH                    # lane width of the extended scratch window
    N = tile_rows * Wq                   # packed rows per tile
    NH = halo_rows * Wq                  # packed rows per halo block
    NE = N + 2 * NH                      # packed rows in the scratch window
    K2 = K * K
    # Lane halos only pull from the immediately adjacent packed row:
    assert pad <= Wpack and LH <= L

    def kernel(g_ref, f_ref, ftop_ref, fbot_ref, w1_ref, b1_ref, w2_ref, b2_ref,
               o_ref, ext_ref, wt_ref):
        t = pl.program_id(1)
        last = pl.num_programs(1) - 1

        cur = f_ref[0].astype(jnp.float32)                          # (N, L)

        # ---- per-pixel kernel generation: two block-diagonal 1x1 convs (MXU);
        #      conv2 emits all K*K taps in one wide matmul (tap kk owns lanes kk*L:(kk+1)*L)
        hid = jnp.dot(g_ref[0].astype(jnp.float32), w1_ref[...],
                      preferred_element_type=jnp.float32)
        hid = jnp.maximum(hid + b1_ref[...], 0.0)                   # ReLU(BN(conv1))
        wt_ref[...] = jnp.dot(hid, w2_ref[...],
                              preferred_element_type=jnp.float32) + b2_ref[...]

        # ---- assemble the row-extended + lane-haloed feature window ----
        @pl.when(t > 0)
        def _():
            ext_ref[0:NH, OFF:OFF + L] = ftop_ref[0].astype(jnp.float32)

        @pl.when(t == 0)                                            # image top edge
        def _():
            ext_ref[0:NH, OFF:OFF + L] = jnp.zeros((NH, L), jnp.float32)

        ext_ref[NH:NH + N, OFF:OFF + L] = cur

        @pl.when(t < last)
        def _():
            ext_ref[NH + N:NE, OFF:OFF + L] = fbot_ref[0].astype(jnp.float32)

        @pl.when(t == last)                                         # image bottom edge
        def _():
            ext_ref[NH + N:NE, OFF:OFF + L] = jnp.zeros((NH, L), jnp.float32)

        # Lane halos: physically adjacent image columns live one packed row away.
        # Packed rows at the image left/right edge get zero halos (this IS the
        # conv zero-padding — no per-tap masks needed in the loop below).
        r = jax.lax.broadcasted_iota(jnp.int32, (NE, LH), 0)
        left = pltpu.roll(ext_ref[:, OFF + L - LH:OFF + L], shift=1, axis=0)
        ext_ref[:, OFF - LH:OFF] = jnp.where((r % Wq) == 0, 0.0, left)
        right = pltpu.roll(ext_ref[:, OFF:OFF + LH], shift=NE - 1, axis=0)
        ext_ref[:, OFF + L:EW] = jnp.where((r % Wq) == (Wq - 1), 0.0, right)

        # ---- K*K-tap weighted accumulation + residual ----
        acc = cur
        for dy in range(K):
            r0 = (halo_rows - pad + dy) * Wq
            part = None
            for dx in range(K):
                kk = dy * K + dx
                d = dx - pad
                wt = wt_ref[:, kk * L:(kk + 1) * L]                 # 128-aligned slice
                fs = ext_ref[r0:r0 + N, OFF + d * C:OFF + d * C + L]
                contrib = wt * fs
                part = contrib if part is None else part + contrib
            acc = acc + part
        o_ref[0] = acc.astype(o_ref.dtype)

    return kernel


def _involution_layer(feat2, guide2, w1_bd, b1_bd, w2_all, b2_all, *,
                      H, W, C, K, tile_rows, halo_rows):
    B = feat2.shape[0]
    Wpack = _packing(C)
    Wq = W // Wpack
    L = Wpack * C
    pad = (K - 1) // 2
    K2 = K * K
    N = tile_rows * Wq
    NH = halo_rows * Wq
    NE = N + 2 * NH
    LH = pad * C
    OFF = ((LH + 127) // 128) * 128
    EW = OFF + L + LH
    n_tiles = H // tile_rows
    Crb = w1_bd.shape[1]
    th_per_halo = tile_rows // halo_rows
    n_halo_blocks = H // halo_rows

    main_idx = lambda b, t: (b, t, 0)
    top_idx = lambda b, t: (b, jnp.maximum(t * th_per_halo - 1, 0), 0)
    bot_idx = lambda b, t: (b, jnp.minimum((t + 1) * th_per_halo, n_halo_blocks - 1), 0)
    const2 = lambda b, t: (0, 0)

    # Scoped-VMEM limit from the actual per-step footprint (double-buffered blocks
    # + weights + scratch), capped generation-aware by _vmem_budget_bytes().
    need = 4 * (2 * (3 * N * L + 2 * NH * L)
                + 2 * (L * Crb + Crb + Crb * K2 * L + K2 * L)
                + NE * EW + N * K2 * L)
    vmem_limit = int(min(_vmem_budget_bytes(), max(need + (8 << 20), 32 << 20)))

    kernel = _make_involution_kernel(tile_rows, W, C, K, Wpack, halo_rows)
    return pl.pallas_call(
        kernel,
        out_shape=jax.ShapeDtypeStruct((B, H * Wq, L), feat2.dtype),
        grid=(B, n_tiles),
        in_specs=[
            pl.BlockSpec((1, N, L), main_idx),        # guide (packed)
            pl.BlockSpec((1, N, L), main_idx),        # feature rows of this tile
            pl.BlockSpec((1, NH, L), top_idx),        # rows just above the tile
            pl.BlockSpec((1, NH, L), bot_idx),        # rows just below the tile
            pl.BlockSpec((L, Crb), const2),           # conv1 weight (BN folded, block-diag)
            pl.BlockSpec((1, Crb), const2),           # conv1 bias
            pl.BlockSpec((Crb, K2 * L), const2),      # conv2 weight, all taps fused
            pl.BlockSpec((1, K2 * L), const2),        # conv2 bias, all taps fused
        ],
        out_specs=pl.BlockSpec((1, N, L), main_idx),
        scratch_shapes=[pltpu.VMEM((NE, EW), jnp.float32),        # extended feature window
                        pltpu.VMEM((N, K2 * L), jnp.float32)],    # per-pixel tap weights
        compiler_params=pltpu.CompilerParams(
            dimension_semantics=("parallel", "parallel"),
            vmem_limit_bytes=vmem_limit),
    )(guide2, feat2, feat2, feat2, w1_bd, b1_bd, w2_all, b2_all)


def cross_involution_forward(feature, guide, packed_params, kernel_size,
                             tile_rows=None):
    """feature, guide: (B, H, W, C) NHWC.  Applies all involution layers."""
    B, H, W, C = feature.shape
    K = kernel_size
    pad = (K - 1) // 2
    Wpack = _packing(C)
    assert W % Wpack == 0, "W must be divisible by the lane packing factor"
    Wq = W // Wpack
    L = Wpack * C
    # lane-halo scheme: horizontal halo comes only from the adjacent packed row
    assert pad <= Wpack, "kernel_size too large for this channel / lane packing"

    # halo block = smallest row count >= pad whose packed-row count is 8-aligned
    step = 8 // math.gcd(Wq, 8)
    halo_rows = ((pad + step - 1) // step) * step
    assert H % halo_rows == 0

    if tile_rows is None:
        budget = _vmem_budget_bytes()
        # live set per step ~ (2x main/halo blocks) + ext window + K^2 tap-weight scratch
        target = max(1 << 20, budget // (2 * K * K + 10))
        tile_rows = _pick_tile_rows(H, Wq, halo_rows, row_bytes=W * C * 4,
                                    target_bytes=target)
    assert H % tile_rows == 0 and tile_rows % halo_rows == 0

    feat2 = feature.reshape(B, H * Wq, L)
    guide2 = guide.reshape(B, H * Wq, L)
    for (w1_bd, b1_bd, w2_all, b2_all) in packed_params:
        feat2 = _involution_layer(feat2, guide2, w1_bd, b1_bd, w2_all, b2_all,
                                  H=H, W=W, C=C, K=K,
                                  tile_rows=tile_rows, halo_rows=halo_rows)
    return feat2.reshape(B, H, W, C)


# --------------------------- parameter handling ------------------------------ #
def init_params(key, channels, kernel_size, num_layers, group_channels=16,
                reduction_ratio=4):
    """Deterministic synthetic parameters matching the torch module's shapes."""
    Cr = channels // reduction_ratio
    groups = channels // group_channels
    K2 = kernel_size * kernel_size
    raw = []
    for _ in range(num_layers):
        key, k1, k2, k3, k4, k5, k6, k7 = jax.random.split(key, 8)
        w1 = jax.random.normal(k1, (channels, Cr), jnp.float32) * 0.1      # conv1 (no bias; BN follows)
        gamma = jax.random.uniform(k2, (Cr,), jnp.float32, 0.5, 1.5)
        beta = jax.random.normal(k3, (Cr,), jnp.float32) * 0.1
        mean = jax.random.normal(k4, (Cr,), jnp.float32) * 0.1
        var = jax.random.uniform(k5, (Cr,), jnp.float32, 0.5, 1.5)
        w2 = jax.random.normal(k6, (Cr, K2 * groups), jnp.float32) * 0.1   # conv2 weight
        b2 = jax.random.normal(k7, (K2 * groups,), jnp.float32) * 0.1      # conv2 bias
        raw.append((w1, gamma, beta, mean, var, w2, b2))
    return raw


def prepare_params(raw_params, channels, kernel_size, group_channels=16, eps=1e-5):
    """Fold BN into conv1 (inference mode), expand conv2 per channel, pack both 1x1
    convs as block-diagonal matrices over the lane-packing factor, and fuse all
    K*K conv2 taps into one wide weight (tap kk -> output lanes kk*L:(kk+1)*L)."""
    C = channels
    K = kernel_size
    K2 = K * K
    Cr = raw_params[0][0].shape[1]
    Wpack = _packing(C)
    L = Wpack * C
    Crb = Wpack * Cr
    g_idx = np.arange(C) // group_channels
    col = (g_idx[None, :] * K2 + np.arange(K2)[:, None]).reshape(-1)   # order [kk, c]

    packed = []
    for (w1, gamma, beta, mean, var, w2, b2) in raw_params:
        scale = np.asarray(gamma) / np.sqrt(np.asarray(var) + eps)
        w1f = np.asarray(w1) * scale[None, :]                  # (C, Cr)
        b1f = np.asarray(beta) - np.asarray(mean) * scale      # (Cr,)
        w2e = np.asarray(w2)[:, col].reshape(Cr, K2, C)        # (Cr, K2, C)
        b2e = np.asarray(b2)[col].reshape(K2, C)               # (K2, C)

        w1_bd = np.zeros((L, Crb), np.float32)
        b1_bd = np.zeros((1, Crb), np.float32)
        w2_all = np.zeros((Crb, K2 * L), np.float32)
        b2_all = np.zeros((1, K2 * L), np.float32)
        for wq in range(Wpack):
            w1_bd[wq * C:(wq + 1) * C, wq * Cr:(wq + 1) * Cr] = w1f
            b1_bd[0, wq * Cr:(wq + 1) * Cr] = b1f
            for kk in range(K2):
                w2_all[wq * Cr:(wq + 1) * Cr, kk * L + wq * C:kk * L + (wq + 1) * C] = w2e[:, kk, :]
                b2_all[0, kk * L + wq * C:kk * L + (wq + 1) * C] = b2e[kk]
        packed.append((jnp.asarray(w1_bd), jnp.asarray(b1_bd),
                       jnp.asarray(w2_all), jnp.asarray(b2_all)))
    return packed


# ------------------------------ pure-JAX reference --------------------------- #
def reference_forward(feature, guide, raw_params, kernel_size, group_channels=16,
                      eps=1e-5):
    B, H, W, C = feature.shape
    gc = group_channels
    G = C // gc
    K = kernel_size
    K2 = K * K
    pad = (K - 1) // 2
    for (w1, gamma, beta, mean, var, w2, b2) in raw_params:
        h1 = jnp.einsum('bhwc,cr->bhwr', guide, w1)
        h1 = (h1 - mean) / jnp.sqrt(var + eps) * gamma + beta
        h1 = jnp.maximum(h1, 0.0)
        wt = jnp.einsum('bhwr,ro->bhwo', h1, w2) + b2       # o = g*K2 + kk
        wt = wt.reshape(B, H, W, G, K2)
        fp = jnp.pad(feature, ((0, 0), (pad, pad), (pad, pad), (0, 0)))
        acc = jnp.zeros_like(feature)
        for kh in range(K):
            for kw in range(K):
                kk = kh * K + kw
                sh = fp[:, kh:kh + H, kw:kw + W, :]
                wk = jnp.repeat(wt[..., kk], gc, axis=-1)
                acc = acc + wk * sh
        feature = acc + feature
    return feature


# ---------------------------------- main ------------------------------------- #
if __name__ == "__main__":
    channels = 32          # divisible by group_channels=16 and reduction_ratio=4
    kernel_size = 3
    num_layers = 2
    B, H, W = 2, 24, 16

    key = jax.random.PRNGKey(0)
    kf, kg, kp = jax.random.split(key, 3)
    feature = jax.random.normal(kf, (B, H, W, channels), jnp.float32)
    guide = jax.random.normal(kg, (B, H, W, channels), jnp.float32)

    raw_params = init_params(kp, channels, kernel_size, num_layers)
    packed_params = prepare_params(raw_params, channels, kernel_size)

    ref = jax.block_until_ready(reference_forward(feature, guide, raw_params,
                                                  kernel_size))

    # Small explicit tiles: exercises first / interior / last tile halo paths.
    run_tiled = jax.jit(functools.partial(cross_involution_forward,
                                          kernel_size=kernel_size, tile_rows=8))
    out_tiled = jax.block_until_ready(run_tiled(feature, guide, packed_params))
    np.testing.assert_allclose(np.asarray(out_tiled), np.asarray(ref),
                               rtol=1e-4, atol=1e-4)

    # Auto-picked tile size (what production-sized inputs would use).
    run_auto = jax.jit(functools.partial(cross_involution_forward,
                                         kernel_size=kernel_size))
    out_auto = jax.block_until_ready(run_auto(feature, guide, packed_params))
    np.testing.assert_allclose(np.asarray(out_auto), np.asarray(ref),
                               rtol=1e-4, atol=1e-4)

    print("KERNEL_OK")
</pallas_src>

<mosaic_0001>
module attributes {stable_mosaic.version = 11 : i64} {
  func.func @kernel(%arg0: i32, %arg1: i32, %arg2: memref<1x32x128xf32, #tpu.memory_space<vmem>>, %arg3: memref<1x32x128xf32, #tpu.memory_space<vmem>>, %arg4: memref<1x8x128xf32, #tpu.memory_space<vmem>>, %arg5: memref<1x8x128xf32, #tpu.memory_space<vmem>>, %arg6: memref<128x32xf32, #tpu.memory_space<vmem>>, %arg7: memref<1x32xf32, #tpu.memory_space<vmem>>, %arg8: memref<32x1152xf32, #tpu.memory_space<vmem>>, %arg9: memref<1x1152xf32, #tpu.memory_space<vmem>>, %arg10: memref<1x32x128xf32, #tpu.memory_space<vmem>>, %arg11: memref<48x288xf32, #tpu.memory_space<vmem>>, %arg12: memref<32x1152xf32, #tpu.memory_space<vmem>>) attributes {dimension_semantics = [#tpu.dimension_semantics<parallel>, #tpu.dimension_semantics<parallel>], iteration_bounds = array<i64: 2, 3>, scalar_prefetch = 0 : i64, scratch_operands = 2 : i64, tpu.core_type = #tpu.core_type<tc>, window_params = [{transform_indices = @transform_0, window_bounds = array<i64: 1, 32, 128>}, {transform_indices = @transform_1, window_bounds = array<i64: 1, 32, 128>}, {transform_indices = @transform_2, window_bounds = array<i64: 1, 8, 128>}, {transform_indices = @transform_3, window_bounds = array<i64: 1, 8, 128>}, {pipeline_mode = #tpu.pipeline_mode<synchronous>, transform_indices = @transform_4, window_bounds = array<i64: 128, 32>}, {pipeline_mode = #tpu.pipeline_mode<synchronous>, transform_indices = @transform_5, window_bounds = array<i64: 1, 32>}, {pipeline_mode = #tpu.pipeline_mode<synchronous>, transform_indices = @transform_6, window_bounds = array<i64: 32, 1152>}, {pipeline_mode = #tpu.pipeline_mode<synchronous>, transform_indices = @transform_7, window_bounds = array<i64: 1, 1152>}, {transform_indices = @transform_8, window_bounds = array<i64: 1, 32, 128>}]} {
    %c0 = arith.constant 0 : index
    %c0_0 = arith.constant 0 : index
    %c0_1 = arith.constant 0 : index
    %0 = vector.load %arg3[%c0, %c0_0, %c0_1] : memref<1x32x128xf32, #tpu.memory_space<vmem>>, vector<1x32x128xf32>
    %1 = vector.shape_cast %0 : vector<1x32x128xf32> to vector<32x128xf32>
    %c0_2 = arith.constant 0 : index
    %c0_3 = arith.constant 0 : index
    %c0_4 = arith.constant 0 : index
    %2 = vector.load %arg2[%c0_2, %c0_3, %c0_4] : memref<1x32x128xf32, #tpu.memory_space<vmem>>, vector<1x32x128xf32>
    %3 = vector.shape_cast %2 : vector<1x32x128xf32> to vector<32x128xf32>
    %c0_5 = arith.constant 0 : index
    %c0_6 = arith.constant 0 : index
    %4 = vector.load %arg6[%c0_5, %c0_6] : memref<128x32xf32, #tpu.memory_space<vmem>>, vector<128x32xf32>
    %cst = arith.constant dense<0.000000e+00> : vector<32x32xf32>
    %5 = tpu.matmul %3, %4, %cst {dimension_numbers = #tpu.dot_dimension_numbers<[1], [0], [0], [1], [0, 0, 1, 1], [], []>} : vector<32x128xf32>, vector<128x32xf32>, vector<32x32xf32> -> vector<32x32xf32>
    %c0_7 = arith.constant 0 : index
    %c0_8 = arith.constant 0 : index
    %6 = vector.load %arg7[%c0_7, %c0_8] : memref<1x32xf32, #tpu.memory_space<vmem>>, vector<1x32xf32>
    %7 = vector.broadcast %6 : vector<1x32xf32> to vector<32x32xf32>
    %8 = arith.addf %5, %7 : vector<32x32xf32>
    %cst_9 = arith.constant 0.000000e+00 : f32
    %9 = vector.broadcast %cst_9 : f32 to vector<32x32xf32>
    %10 = arith.maximumf %8, %9 : vector<32x32xf32>
    %c0_10 = arith.constant 0 : index
    %c0_11 = arith.constant 0 : index
    %11 = vector.load %arg8[%c0_10, %c0_11] : memref<32x1152xf32, #tpu.memory_space<vmem>>, vector<32x1152xf32>
    %cst_12 = arith.constant dense<0.000000e+00> : vector<32x1152xf32>
    %12 = tpu.matmul %10, %11, %cst_12 {dimension_numbers = #tpu.dot_dimension_numbers<[1], [0], [0], [1], [0, 0, 1, 1], [], []>} : vector<32x32xf32>, vector<32x1152xf32>, vector<32x1152xf32> -> vector<32x1152xf32>
    %c0_13 = arith.constant 0 : index
    %c0_14 = arith.constant 0 : index
    %13 = vector.load %arg9[%c0_13, %c0_14] : memref<1x1152xf32, #tpu.memory_space<vmem>>, vector<1x1152xf32>
    %14 = vector.broadcast %13 : vector<1x1152xf32> to vector<32x1152xf32>
    %15 = arith.addf %12, %14 : vector<32x1152xf32>
    %c0_15 = arith.constant 0 : index
    %c0_16 = arith.constant 0 : index
    %16 = vector.load %arg12[%c0_15, %c0_16] : memref<32x1152xf32, #tpu.memory_space<vmem>>, vector<32x1152xf32>
    tpu.vector_store %arg12[%c0_15, %c0_16], %15 {strides = array<i32>} : memref<32x1152xf32, #tpu.memory_space<vmem>>, vector<32x1152xf32>,
    %c0_i32 = arith.constant 0 : i32
    %17 = arith.cmpi sgt, %arg1, %c0_i32 : i32
    %18 = arith.extui %17 : i1 to i32
    %c0_i32_17 = arith.constant 0 : i32
    %19 = arith.cmpi ne, %18, %c0_i32_17 : i32
    scf.if %19 {
      %c0_72 = arith.constant 0 : index
      %c0_73 = arith.constant 0 : index
      %c0_74 = arith.constant 0 : index
      %116 = vector.load %arg4[%c0_72, %c0_73, %c0_74] : memref<1x8x128xf32, #tpu.memory_space<vmem>>, vector<1x8x128xf32>
      %117 = vector.shape_cast %116 : vector<1x8x128xf32> to vector<8x128xf32>
      %c0_75 = arith.constant 0 : index
      %c128_76 = arith.constant 128 : index
      %118 = vector.load %arg11[%c0_75, %c128_76] : memref<48x288xf32, #tpu.memory_space<vmem>>, vector<8x128xf32>
      tpu.vector_store %arg11[%c0_75, %c128_76], %117 {strides = array<i32>} : memref<48x288xf32, #tpu.memory_space<vmem>>, vector<8x128xf32>,
    } else {
    }
    %c0_i32_18 = arith.constant 0 : i32
    %20 = arith.cmpi eq, %arg1, %c0_i32_18 : i32
    %21 = arith.extui %20 : i1 to i32
    %c0_i32_19 = arith.constant 0 : i32
    %22 = arith.cmpi ne, %21, %c0_i32_19 : i32
    scf.if %22 {
      %cst_72 = arith.constant 0.000000e+00 : f32
      %116 = vector.broadcast %cst_72 : f32 to vector<8x128xf32>
      %c0_73 = arith.constant 0 : index
      %c128_74 = arith.constant 128 : index
      %117 = vector.load %arg11[%c0_73, %c128_74] : memref<48x288xf32, #tpu.memory_space<vmem>>, vector<8x128xf32>
      tpu.vector_store %arg11[%c0_73, %c128_74], %116 {strides = array<i32>} : memref<48x288xf32, #tpu.memory_space<vmem>>, vector<8x128xf32>,
    } else {
    }
    %c8 = arith.constant 8 : index
    %c128 = arith.constant 128 : index
    %23 = vector.load %arg11[%c8, %c128] : memref<48x288xf32, #tpu.memory_space<vmem>>, vector<32x128xf32>
    tpu.vector_store %arg11[%c8, %c128], %1 {strides = array<i32>} : memref<48x288xf32, #tpu.memory_space<vmem>>, vector<32x128xf32>,
    %c2_i32 = arith.constant 2 : i32
    %24 = arith.cmpi slt, %arg1, %c2_i32 : i32
    %25 = arith.extui %24 : i1 to i32
    %c0_i32_20 = arith.constant 0 : i32
    %26 = arith.cmpi ne, %25, %c0_i32_20 : i32
    scf.if %26 {
      %c0_72 = arith.constant 0 : index
      %c0_73 = arith.constant 0 : index
      %c0_74 = arith.constant 0 : index
      %116 = vector.load %arg5[%c0_72, %c0_73, %c0_74] : memref<1x8x128xf32, #tpu.memory_space<vmem>>, vector<1x8x128xf32>
      %117 = vector.shape_cast %116 : vector<1x8x128xf32> to vector<8x128xf32>
      %c40 = arith.constant 40 : index
      %c128_75 = arith.constant 128 : index
      %118 = vector.load %arg11[%c40, %c128_75] : memref<48x288xf32, #tpu.memory_space<vmem>>, vector<8x128xf32>
      tpu.vector_store %arg11[%c40, %c128_75], %117 {strides = array<i32>} : memref<48x288xf32, #tpu.memory_space<vmem>>, vector<8x128xf32>,
    } else {
    }
    %c2_i32_21 = arith.constant 2 : i32
    %27 = arith.cmpi eq, %arg1, %c2_i32_21 : i32
    %28 = arith.extui %27 : i1 to i32
    %c0_i32_22 = arith.constant 0 : i32
    %29 = arith.cmpi ne, %28, %c0_i32_22 : i32
    scf.if %29 {
      %cst_72 = arith.constant 0.000000e+00 : f32
      %116 = vector.broadcast %cst_72 : f32 to vector<8x128xf32>
      %c40 = arith.constant 40 : index
      %c128_73 = arith.constant 128 : index
      %117 = vector.load %arg11[%c40, %c128_73] : memref<48x288xf32, #tpu.memory_space<vmem>>, vector<8x128xf32>
      tpu.vector_store %arg11[%c40, %c128_73], %116 {strides = array<i32>} : memref<48x288xf32, #tpu.memory_space<vmem>>, vector<8x128xf32>,
    } else {
    }
    %30 = tpu.iota {dimensions = array<i32: 0>} : vector<48x32xi32>
    %c0_23 = arith.constant 0 : index
    %c224 = arith.constant 224 : index
    %31 = vector.load %arg11[%c0_23, %c224] : memref<48x288xf32, #tpu.memory_space<vmem>>, vector<48x32xf32>
    %c1_i32 = arith.constant 1 : i32
    %32 = tpu.dynamic_rotate %31 by %c1_i32 dim 0 : vector<48x32xf32>, i32 -> vector<48x32xf32>
    %c4_i32 = arith.constant 4 : i32
    %c0_i32_24 = arith.constant 0 : i32
    %33 = arith.cmpi eq, %c4_i32, %c0_i32_24 : i32
    %c1_i32_25 = arith.constant 1 : i32
    %34 = arith.select %33, %c1_i32_25, %c4_i32 : i32
    %35 = vector.broadcast %34 : i32 to vector<48x32xi32>
    %36 = arith.remsi %30, %35 : vector<48x32xi32>
    %c0_i32_26 = arith.constant 0 : i32
    %37 = vector.broadcast %c0_i32_26 : i32 to vector<48x32xi32>
    %38 = arith.cmpi ne, %36, %37 : vector<48x32xi32>
    %c0_i32_27 = arith.constant 0 : i32
    %39 = vector.broadcast %c0_i32_27 : i32 to vector<48x32xi32>
    %40 = arith.cmpi slt, %36, %39 : vector<48x32xi32>
    %c0_i32_28 = arith.constant 0 : i32
    %41 = arith.cmpi slt, %34, %c0_i32_28 : i32
    %42 = vector.broadcast %41 : i1 to vector<48x32xi1>
    %43 = vector.broadcast %42 : vector<48x32xi1> to vector<48x32xi1>
    %44 = arith.xori %40, %43 : vector<48x32xi1>
    %45 = arith.andi %44, %38 : vector<48x32xi1>
    %46 = vector.broadcast %34 : i32 to vector<48x32xi32>
    %47 = arith.addi %36, %46 : vector<48x32xi32>
    %48 = arith.select %45, %47, %36 : vector<48x32xi1>, vector<48x32xi32>
    %c0_i32_29 = arith.constant 0 : i32
    %49 = vector.broadcast %c0_i32_29 : i32 to vector<48x32xi32>
    %50 = arith.cmpi eq, %48, %49 : vector<48x32xi32>
    %cst_30 = arith.constant 0.000000e+00 : f32
    %51 = vector.broadcast %cst_30 : f32 to vector<48x32xf32>
    %52 = arith.select %50, %51, %32 : vector<48x32xi1>, vector<48x32xf32>
    %c0_31 = arith.constant 0 : index
    %c96 = arith.constant 96 : index
    %53 = vector.load %arg11[%c0_31, %c96] : memref<48x288xf32, #tpu.memory_space<vmem>>, vector<48x32xf32>
    tpu.vector_store %arg11[%c0_31, %c96], %52 {strides = array<i32>} : memref<48x288xf32, #tpu.memory_space<vmem>>, vector<48x32xf32>,
    %c0_32 = arith.constant 0 : index
    %c128_33 = arith.constant 128 : index
    %54 = vector.load %arg11[%c0_32, %c128_33] : memref<48x288xf32, #tpu.memory_space<vmem>>, vector<48x32xf32>
    %c47_i32 = arith.constant 47 : i32
    %55 = tpu.dynamic_rotate %54 by %c47_i32 dim 0 : vector<48x32xf32>, i32 -> vector<48x32xf32>
    %c4_i32_34 = arith.constant 4 : i32
    %c0_i32_35 = arith.constant 0 : i32
    %56 = arith.cmpi eq, %c4_i32_34, %c0_i32_35 : i32
    %c1_i32_36 = arith.constant 1 : i32
    %57 = arith.select %56, %c1_i32_36, %c4_i32_34 : i32
    %58 = vector.broadcast %57 : i32 to vector<48x32xi32>
    %59 = arith.remsi %30, %58 : vector<48x32xi32>
    %c0_i32_37 = arith.constant 0 : i32
    %60 = vector.broadcast %c0_i32_37 : i32 to vector<48x32xi32>
    %61 = arith.cmpi ne, %59, %60 : vector<48x32xi32>
    %c0_i32_38 = arith.constant 0 : i32
    %62 = vector.broadcast %c0_i32_38 : i32 to vector<48x32xi32>
    %63 = arith.cmpi slt, %59, %62 : vector<48x32xi32>
    %c0_i32_39 = arith.constant 0 : i32
    %64 = arith.cmpi slt, %57, %c0_i32_39 : i32
    %65 = vector.broadcast %64 : i1 to vector<48x32xi1>
    %66 = vector.broadcast %65 : vector<48x32xi1> to vector<48x32xi1>
    %67 = arith.xori %63, %66 : vector<48x32xi1>
    %68 = arith.andi %67, %61 : vector<48x32xi1>
    %69 = vector.broadcast %57 : i32 to vector<48x32xi32>
    %70 = arith.addi %59, %69 : vector<48x32xi32>
    %71 = arith.select %68, %70, %59 : vector<48x32xi1>, vector<48x32xi32>
    %c3_i32 = arith.constant 3 : i32
    %72 = vector.broadcast %c3_i32 : i32 to vector<48x32xi32>
    %73 = arith.cmpi eq, %71, %72 : vector<48x32xi32>
    %cst_40 = arith.constant 0.000000e+00 : f32
    %74 = vector.broadcast %cst_40 : f32 to vector<48x32xf32>
    %75 = arith.select %73, %74, %55 : vector<48x32xi1>, vector<48x32xf32>
    %c0_41 = arith.constant 0 : index
    %c256 = arith.constant 256 : index
    %76 = vector.load %arg11[%c0_41, %c256] : memref<48x288xf32, #tpu.memory_space<vmem>>, vector<48x32xf32>
    tpu.vector_store %arg11[%c0_41, %c256], %75 {strides = array<i32>} : memref<48x288xf32, #tpu.memory_space<vmem>>, vector<48x32xf32>,
    %c0_42 = arith.constant 0 : index
    %c0_43 = arith.constant 0 : index
    %77 = vector.load %arg12[%c0_42, %c0_43] : memref<32x1152xf32, #tpu.memory_space<vmem>>, vector<32x128xf32>
    %c4 = arith.constant 4 : index
    %c96_44 = arith.constant 96 : index
    %78 = vector.load %arg11[%c4, %c96_44] : memref<48x288xf32, #tpu.memory_space<vmem>>, vector<32x128xf32>
    %79 = arith.mulf %77, %78 : vector<32x128xf32>
    %c0_45 = arith.constant 0 : index
    %c128_46 = arith.constant 128 : index
    %80 = vector.load %arg12[%c0_45, %c128_46] : memref<32x1152xf32, #tpu.memory_space<vmem>>, vector<32x128xf32>
    %c4_47 = arith.constant 4 : index
    %c128_48 = arith.constant 128 : index
    %81 = vector.load %arg11[%c4_47, %c128_48] : memref<48x288xf32, #tpu.memory_space<vmem>>, vector<32x128xf32>
    %82 = arith.mulf %80, %81 : vector<32x128xf32>
    %83 = arith.addf %79, %82 : vector<32x128xf32>
    %c0_49 = arith.constant 0 : index
    %c256_50 = arith.constant 256 : index
    %84 = vector.load %arg12[%c0_49, %c256_50] : memref<32x1152xf32, #tpu.memory_space<vmem>>, vector<32x128xf32>
    %c4_51 = arith.constant 4 : index
    %c160 = arith.constant 160 : index
    %85 = vector.load %arg11[%c4_51, %c160] : memref<48x288xf32, #tpu.memory_space<vmem>>, vector<32x128xf32>
    %86 = arith.mulf %84, %85 : vector<32x128xf32>
    %87 = arith.addf %83, %86 : vector<32x128xf32>
    %88 = arith.addf %1, %87 : vector<32x128xf32>
    %c0_52 = arith.constant 0 : index
    %c384 = arith.constant 384 : index
    %89 = vector.load %arg12[%c0_52, %c384] : memref<32x1152xf32, #tpu.memory_space<vmem>>, vector<32x128xf32>
    %c8_53 = arith.constant 8 : index
    %c96_54 = arith.constant 96 : index
    %90 = vector.load %arg11[%c8_53, %c96_54] : memref<48x288xf32, #tpu.memory_space<vmem>>, vector<32x128xf32>
    %91 = arith.mulf %89, %90 : vector<32x128xf32>
    %c0_55 = arith.constant 0 : index
    %c512 = arith.constant 512 : index
    %92 = vector.load %arg12[%c0_55, %c512] : memref<32x1152xf32, #tpu.memory_space<vmem>>, vector<32x128xf32>
    %c8_56 = arith.constant 8 : index
    %c128_57 = arith.constant 128 : index
    %93 = vector.load %arg11[%c8_56, %c128_57] : memref<48x288xf32, #tpu.memory_space<vmem>>, vector<32x128xf32>
    %94 = arith.mulf %92, %93 : vector<32x128xf32>
    %95 = arith.addf %91, %94 : vector<32x128xf32>
    %c0_58 = arith.constant 0 : index
    %c640 = arith.constant 640 : index
    %96 = vector.load %arg12[%c0_58, %c640] : memref<32x1152xf32, #tpu.memory_space<vmem>>, vector<32x128xf32>
    %c8_59 = arith.constant 8 : index
    %c160_60 = arith.constant 160 : index
    %97 = vector.load %arg11[%c8_59, %c160_60] : memref<48x288xf32, #tpu.memory_space<vmem>>, vector<32x128xf32>
    %98 = arith.mulf %96, %97 : vector<32x128xf32>
    %99 = arith.addf %95, %98 : vector<32x128xf32>
    %100 = arith.addf %88, %99 : vector<32x128xf32>
    %c0_61 = arith.constant 0 : index
    %c768 = arith.constant 768 : index
    %101 = vector.load %arg12[%c0_61, %c768] : memref<32x1152xf32, #tpu.memory_space<vmem>>, vector<32x128xf32>
    %c12 = arith.constant 12 : index
    %c96_62 = arith.constant 96 : index
    %102 = vector.load %arg11[%c12, %c96_62] : memref<48x288xf32, #tpu.memory_space<vmem>>, vector<32x128xf32>
    %103 = arith.mulf %101, %102 : vector<32x128xf32>
    %c0_63 = arith.constant 0 : index
    %c896 = arith.constant 896 : index
    %104 = vector.load %arg12[%c0_63, %c896] : memref<32x1152xf32, #tpu.memory_space<vmem>>, vector<32x128xf32>
    %c12_64 = arith.constant 12 : index
    %c128_65 = arith.constant 128 : index
    %105 = vector.load %arg11[%c12_64, %c128_65] : memref<48x288xf32, #tpu.memory_space<vmem>>, vector<32x128xf32>
    %106 = arith.mulf %104, %105 : vector<32x128xf32>
    %107 = arith.addf %103, %106 : vector<32x128xf32>
    %c0_66 = arith.constant 0 : index
    %c1024 = arith.constant 1024 : index
    %108 = vector.load %arg12[%c0_66, %c1024] : memref<32x1152xf32, #tpu.memory_space<vmem>>, vector<32x128xf32>
    %c12_67 = arith.constant 12 : index
    %c160_68 = arith.constant 160 : index
    %109 = vector.load %arg11[%c12_67, %c160_68] : memref<48x288xf32, #tpu.memory_space<vmem>>, vector<32x128xf32>
    %110 = arith.mulf %108, %109 : vector<32x128xf32>
    %111 = arith.addf %107, %110 : vector<32x128xf32>
    %112 = arith.addf %100, %111 : vector<32x128xf32>
    %c0_69 = arith.constant 0 : index
    %c0_70 = arith.constant 0 : index
    %c0_71 = arith.constant 0 : index
    %113 = vector.load %arg10[%c0_69, %c0_70, %c0_71] : memref<1x32x128xf32, #tpu.memory_space<vmem>>, vector<1x32x128xf32>
    %114 = vector.shape_cast %113 : vector<1x32x128xf32> to vector<32x128xf32>
    %115 = vector.shape_cast %112 : vector<32x128xf32> to vector<1x32x128xf32>
    tpu.vector_store %arg10[%c0_69, %c0_70, %c0_71], %115 {strides = array<i32>} : memref<1x32x128xf32, #tpu.memory_space<vmem>>, vector<1x32x128xf32>,
    return
  }
  func.func @transform_0(%arg0: i32, %arg1: i32) -> (i32, i32, i32) {
    %c0_i32 = arith.constant 0 : i32
    %c0_i32_0 = arith.constant 0 : i32
    return %arg0, %arg1, %c0_i32 : i32, i32, i32
  }
  func.func @transform_1(%arg0: i32, %arg1: i32) -> (i32, i32, i32) {
    %c0_i32 = arith.constant 0 : i32
    %c0_i32_0 = arith.constant 0 : i32
    return %arg0, %arg1, %c0_i32 : i32, i32, i32
  }
  func.func @transform_2(%arg0: i32, %arg1: i32) -> (i32, i32, i32) {
    %c4_i32 = arith.constant 4 : i32
    %0 = arith.muli %arg1, %c4_i32 : i32
    %c1_i32 = arith.constant 1 : i32
    %1 = arith.subi %0, %c1_i32 : i32
    %c0_i32 = arith.constant 0 : i32
    %2 = arith.maxsi %1, %c0_i32 : i32
    %c0_i32_0 = arith.constant 0 : i32
    %c0_i32_1 = arith.constant 0 : i32
    return %arg0, %2, %c0_i32_0 : i32, i32, i32
  }
  func.func @transform_3(%arg0: i32, %arg1: i32) -> (i32, i32, i32) {
    %c1_i32 = arith.constant 1 : i32
    %0 = arith.addi %arg1, %c1_i32 : i32
    %c4_i32 = arith.constant 4 : i32
    %1 = arith.muli %0, %c4_i32 : i32
    %c11_i32 = arith.constant 11 : i32
    %2 = arith.minsi %1, %c11_i32 : i32
    %c0_i32 = arith.constant 0 : i32
    %c0_i32_0 = arith.constant 0 : i32
    return %arg0, %2, %c0_i32 : i32, i32, i32
  }
  func.func @transform_4(%arg0: i32, %arg1: i32) -> (i32, i32) {
    %c0_i32 = arith.constant 0 : i32
    %c0_i32_0 = arith.constant 0 : i32
    %c0_i32_1 = arith.constant 0 : i32
    return %c0_i32, %c0_i32_0 : i32, i32
  }
  func.func @transform_5(%arg0: i32, %arg1: i32) -> (i32, i32) {
    %c0_i32 = arith.constant 0 : i32
    %c0_i32_0 = arith.constant 0 : i32
    %c0_i32_1 = arith.constant 0 : i32
    return %c0_i32, %c0_i32_0 : i32, i32
  }
  func.func @transform_6(%arg0: i32, %arg1: i32) -> (i32, i32) {
    %c0_i32 = arith.constant 0 : i32
    %c0_i32_0 = arith.constant 0 : i32
    %c0_i32_1 = arith.constant 0 : i32
    return %c0_i32, %c0_i32_0 : i32, i32
  }
  func.func @transform_7(%arg0: i32, %arg1: i32) -> (i32, i32) {
    %c0_i32 = arith.constant 0 : i32
    %c0_i32_0 = arith.constant 0 : i32
    %c0_i32_1 = arith.constant 0 : i32
    return %c0_i32, %c0_i32_0 : i32, i32
  }
  func.func @transform_8(%arg0: i32, %arg1: i32) -> (i32, i32, i32) {
    %c0_i32 = arith.constant 0 : i32
    %c0_i32_0 = arith.constant 0 : i32
    return %arg0, %arg1, %c0_i32 : i32, i32, i32
  }
}

</mosaic_0001>

<bundles_post_ra>
// kernel: cross_involution_forward.2
= control target key start
LH: loop header
LB: loop body
LE: loop exit
PB: predicated region body
PF: predicated region fallthrough
CT: control target
= control target key end

     0   :  { %s1870_s27 = smov 0   ;;  %s1872_s28 = smov 0   ;;  %s2565_s0 = inlined_call_operand.vmem [shape: f32[2,96,128], index: 0, kind: input, shape index: {}]   ;;  %s2566_s1 = inlined_call_operand.vmem [shape: f32[2,96,128], index: 1, kind: input, shape index: {}, may-alias: {1,2,3}]   ;;  %s2567_s2 = inlined_call_operand.vmem [shape: f32[2,96,128], index: 2, kind: input, shape index: {}, may-alias: {1,2,3}]   ;;  %s2568_s3 = inlined_call_operand.vmem [shape: f32[2,96,128], index: 3, kind: input, shape index: {}, may-alias: {1,2,3}]   ;;  %s2569_s4 = inlined_call_operand.vmem [shape: f32[128,32], index: 4, kind: input, shape index: {}]   ;;  %s2570_s5 = inlined_call_operand.vmem [shape: f32[1,32], index: 5, kind: input, shape index: {}]   ;;  %s2571_s6 = inlined_call_operand.vmem [shape: f32[32,1152], index: 6, kind: input, shape index: {}]   ;;  %s2572_s7 = inlined_call_operand.vmem [shape: f32[1,1152], index: 7, kind: input, shape index: {}]   ;;  %s2573_s8 = inlined_call_operand.vmem [shape: f32[2,96,128], index: 8, kind: output, shape index: {}]  }
   0x1   :  { %2574 = sst [smem:[#allocation4_spill]] %s2566_s1  ;;  %s1874_s29 = smov 0  }
   0x2   :  { %s1876_s30 = smov 0   ;;  %s1878_s9 = smov 0  }
   0x3 LB: > { %s27_s10 = sadd.s32 1, %s1811_s29  ;;  %s30_s11 = sadd.s32 1, %s1815_s30  ;;  %s1819_s9 = sphi %s1878_s9, %s18_s9   ;;  %s1815_s30 = sphi %s1876_s30, %s2580_s30   ;;  %s1811_s29 = sphi %s1874_s29, %s2579_s29   ;;  %s1807_s28 = sphi %s1872_s28, %s2578_s28   ;;  %s1803_s27 = sphi %s1870_s27, %s2577_s27  }
   0x4   : > { %p28_p0 = scmp.ge.s32.totalorder %s27_s10, 3  ;;  %p1656_p1 = scmp.ge.s32.totalorder %s1819_s9, 1 }
   0x5   : > { %p362_p2 = scmp.lt.s32.totalorder %s1819_s9, 7 }
   0x6   : > { %s2582_s10 = smov (%p28_p0, %s27_s10), 0  ;;  %s2584_s11 = smov (!%p28_p0, %s30_s11), %s1815_s30 }
   0x7   : > { %p363_p3 = pnand %p1656_p1, %p362_p2  ;;  %p32_p4 = scmp.ge.s32.totalorder %s2584_s11, 2 }
   0x8   : > { %s1657_s16 = sshll.u32 (!%p363_p3), %s1803_s27, 2  ;;  %p438_p5 = scmp.lt.s32.totalorder (!%p363_p3), %s1807_s28, 1 }
   0x9   : > { %s2586_s11 = smov (%p32_p4, %s2584_s11), 0  ;;  %366 = sbr.rel (%p363_p3) target bundleno = 836 (0x344), region = 52 }
   0xa   : > { %p440_p6 = scmp.lt.s32.totalorder (!%p363_p3), %s1657_s16, 11  ;;  %s1662_s17 = sadd.s32 (!%p363_p3), 4294967295, %s1657_s16 }
   0xb   : > { %p459_p7 = scmp.gt.s32.totalorder (!%p363_p3), %s1662_s17, 0  ;;  %s1725_s24 = sadd.s32 (!%p363_p3), 4, %s1657_s16 }
   0xc   : > { %p1921_p8 = scmp.lt.s32.totalorder (!%p363_p3), %s1725_s24, 11  ;;  %p1663_p9 = scmp.lt.s32.totalorder (!%p363_p3), %s1662_s17, 11 }
   0xd   : > { %s2576_s1 = sld [smem:[#allocation4_spill]] (!%p363_p3)  ;;  %p1712_p10 = scmp.le.s32.totalorder (!%p363_p3), %s1803_s27, 0 }
   0xe   : > { %v522_v0 = vld [vmem:[%s2569_s4 + $0x78] sm:$0xff]  ;;  %v521_v1 = vld [vmem:[%s2569_s4 + $0x70] sm:$0xff]  ;;  %v520_v2 = vld [vmem:[%s2569_s4 + $0x68] sm:$0xff]  ;;  %s2588_s28 = smov (!%p438_p5, %s1807_s28), 1  ;;  %s2590_s17 = smov (!%p459_p7, %s1662_s17), 0  ;;  %vm618_vm0 = vcmask 261120  }
   0xf   : > { %527 = vmatpush.msra.mxu0 %v522_v0  ;;  %s441_s20 = scalar_select %p440_p6, %s1657_s16, 11  ;;  %v519_v3 = vld [vmem:[%s2569_s4 + $0x60] sm:$0xff]  ;;  %v518_v4 = vld [vmem:[%s2569_s4 + $0x58] sm:$0xff]  ;;  %v517_v5 = vld [vmem:[%s2569_s4 + $0x50] sm:$0xff] }
  0x10   : > { %s1915_s23 = smul.u32 12, %s2588_s28  ;;  %v516_v9 = vld [vmem:[%s2569_s4 + $0x48] sm:$0xff]  ;;  %s2592_s24 = smov (!%p1921_p8, %s1725_s24), 11  ;;  %v515_v11 = vld [vmem:[%s2569_s4 + $0x40] sm:$0xff]  ;;  %v514_v12 = vld [vmem:[%s2569_s4 + $0x38] sm:$0xff] }
  0x11   : > { %528 = vmatpush.msra.mxu0 %v521_v1  ;;  %s2594_s17 = smov (!%p1663_p9, %s2590_s17), 11  ;;  %s2596_s24 = smov (!%p1921_p8, %s2592_s24), 11  ;;  %v513_v13 = vld [vmem:[%s2569_s4 + $0x30] sm:$0xff]  ;;  %v512_v14 = vld [vmem:[%s2569_s4 + $0x28] sm:$0xff]  ;;  %v511_v15 = vld [vmem:[%s2569_s4 + $0x20] sm:$0xff] }
  0x12   : > { %s443_s12 = sadd.s32 %s1915_s23, %s441_s20  ;;  %s466_s26 = sadd.s32 %s1915_s23, %s2594_s17  ;;  %v510_v16 = vld [vmem:[%s2569_s4 + $0x18] sm:$0xff]  ;;  %v509_v17 = vld [vmem:[%s2569_s4 + $0x10] sm:$0xff]  ;;  %v508_v19 = vld [vmem:[%s2569_s4 + $0x8] sm:$0xff] }
  0x13   : > { %529 = vmatpush.msra.mxu0 %v520_v2  ;;  %s1925_s14 = sshll.u32 %s443_s12, 3  ;;  %s482_s20 = sadd.s32 %s1915_s23, %s2596_s24  ;;  %v587_v18 = vld [vmem:[%s2571_s6 + $0xd8] sm:$0xff]  ;;  %v507_v20 = vld [vmem:[%s2569_s4] sm:$0xff]  ;;  %v593_v22 = vld [vmem:[%s2571_s6 + $0x108] sm:$0xff] }
  0x14   : > { %s455_s19 = scalar_lea.vmem %s2576_s1, %s1925_s14  ;;  %s1957_s15 = scalar_lea.vmem %s2573_s8, %s1925_s14  ;;  %643 = vmatpush.msra.mxu1 %v587_v18  ;;  %1726 = vmatpush.msra.mxu3 %v587_v18  ;;  %v578_v26 = vld [vmem:[%s2571_s6 + $0x90] sm:$0xff]  ;;  %v584_v27 = vld [vmem:[%s2571_s6 + $0xc0] sm:$0xff]  ;;  %v569_v28 = vld [vmem:[%s2571_s6 + $0x48] sm:$0xff] }
  0x15   : > { %530 = vmatpush.msra.mxu0 %v519_v3  ;;  %v1934_v6 = vld [vmem:[%s455_s19] sm:$0xff]  ;;  %v1936_v7 = vld [vmem:[%s455_s19 + $0x8] sm:$0xff]  ;;  %v1938_v8 = vld [vmem:[%s455_s19 + $0x10] sm:$0xff]  ;;  %s1673_s17 = sshll.u32 %s482_s20, 3  ;;  %s445_s23 = scalar_lea.vmem %s2565_s0, %s1925_s14 }
  0x16   : > { %v1945_v10 = vld [vmem:[%s455_s19 + $0x18] sm:$0xff]  ;;  %s1962_s19 = sshll.u32 %s466_s26, 3  ;;  %s1975_s16 = scalar_lea.vmem %s2568_s3, %s1673_s17  ;;  %v503_v21 = vld [vmem:[%s445_s23] sm:$0xff]  ;;  %v504_v23 = vld [vmem:[%s445_s23 + $0x8] sm:$0xff]  ;;  %644 = vmatpush.msra.mxu1 %v578_v26  ;;  %1727 = vmatpush.msra.mxu3 %v578_v26 }
  0x17   : > { %531 = vmatpush.msra.mxu0 %v518_v4  ;;  %s468_s13 = scalar_lea.vmem %s2567_s2, %s1962_s19  ;;  %v505_v24 = vld [vmem:[%s445_s23 + $0x10] sm:$0xff]  ;;  %v506_v25 = vld [vmem:[%s445_s23 + $0x18] sm:$0xff]  ;;  %v560_v30 = vld [vmem:[%s2571_s6] sm:$0xff] }
  0x18   : > { %v575_v29 = vld [vmem:[%s2571_s6 + $0x78] sm:$0xff]  ;;  %645 = vmatpush.msra.mxu1 %v569_v28  ;;  %v566_v31 = vld [vmem:[%s2571_s6 + $0x30] sm:$0xff]  ;;  %1728 = vmatpush.msra.mxu3 %v569_v28  ;;  %v588_v32 = vld [vmem:[%s2571_s6 + $0xe0] sm:$0xff] }
  0x19   : > { %532 = vmatpush.msra.mxu0 %v517_v5  ;;  %1730 = vmatpush.msra.mxu2 %v588_v32  ;;  %v579_v33 = vld [vmem:[%s2571_s6 + $0x98] sm:$0xff]  ;;  %v570_v34 = vld [vmem:[%s2571_s6 + $0x50] sm:$0xff]  ;;  %v561_v35 = vld [vmem:[%s2571_s6 + $0x8] sm:$0xff] }
  0x1a   : > { %646 = vmatpush.msra.mxu1 %v560_v30  ;;  %1729 = vmatpush.msra.mxu3 %v560_v30  ;;  %v589_v36 = vld [vmem:[%s2571_s6 + $0xe8] sm:$0xff]  ;;  %v591_v37 = vld [vmem:[%s2571_s6 + $0xf8] sm:$0xff]  ;;  %v580_v38 = vld [vmem:[%s2571_s6 + $0xa0] sm:$0xff] }
  0x1b   : > { %533 = vmatpush.msra.mxu0 %v516_v9  ;;  %1731 = vmatpush.msra.mxu2 %v579_v33  ;;  %v582_v39 = vld [vmem:[%s2571_s6 + $0xb0] sm:$0xff]  ;;  %v571_v40 = vld [vmem:[%s2571_s6 + $0x58] sm:$0xff]  ;;  %v573_v41 = vld [vmem:[%s2571_s6 + $0x68] sm:$0xff] }
  0x1c   : > { %672 = vmatpush.msrb.mxu1 %v588_v32  ;;  %701 = vmatpush.msrb.mxu3 %v589_v36  ;;  %v1779_v42 = vld [vmem:[%s2570_s5] ss:$0 sm:$0xff]  ;;  %v562_v43 = vld [vmem:[%s2571_s6 + $0x10] sm:$0xff]  ;;  %v581_v49 = vld [vmem:[%s2571_s6 + $0xa8] sm:$0xff] }
  0x1d   : > { %534 = vmatpush.msra.mxu0 %v515_v11  ;;  %1732 = vmatpush.msra.mxu2 %v570_v34  ;;  %v564_v44 = vld [vmem:[%s2571_s6 + $0x20] sm:$0xff]  ;;  %v590_v48 = vld [vmem:[%s2571_s6 + $0xf0] sm:$0xff]  ;;  %v563_v53 = vld [vmem:[%s2571_s6 + $0x18] sm:$0xff] }
  0x1e   : > { %673 = vmatpush.msrb.mxu1 %v579_v33  ;;  %702 = vmatpush.msrb.mxu3 %v580_v38  ;;  %v572_v50 = vld [vmem:[%s2571_s6 + $0x60] sm:$0xff]  ;;  %v595_v56 = vld [vmem:[%s2571_s6 + $0x118] sm:$0xff]  ;;  %v594_v57 = vld [vmem:[%s2571_s6 + $0x110] sm:$0xff] }
  0x1f   : > { %535 = vmatpush.msra.mxu0 %v514_v12  ;;  %1733 = vmatpush.msra.mxu2 %v561_v35  ;;  %v592_v55 = vld [vmem:[%s2571_s6 + $0x100] sm:$0xff]  ;;  %v583_v58 = vld [vmem:[%s2571_s6 + $0xb8] sm:$0xff]  ;;  %v586_v59 = vld [vmem:[%s2571_s6 + $0xd0] sm:$0xff] }
  0x20   : > { %674 = vmatpush.msrb.mxu1 %v570_v34  ;;  %703 = vmatpush.msrb.mxu3 %v571_v40  ;;  %v585_v60 = vld [vmem:[%s2571_s6 + $0xc8] sm:$0xff]  ;;  %v576_v63 = vld [vmem:[%s2571_s6 + $0x80] sm:$0xff]  ;;  %v567_v1 = vld [vmem:[%s2571_s6 + $0x38] sm:$0xff] }
  0x21   : > { %536 = vmatpush.msra.mxu0 %v513_v13  ;;  %759 = vmatpush.msrb.mxu2 %v591_v37  ;;  %v574_v2 = vld [vmem:[%s2571_s6 + $0x70] sm:$0xff]  ;;  %v577_v3 = vld [vmem:[%s2571_s6 + $0x88] sm:$0xff]  ;;  %v568_v12 = vld [vmem:[%s2571_s6 + $0x40] sm:$0xff] }
  0x22   : > { %675 = vmatpush.msrb.mxu1 %v561_v35  ;;  %704 = vmatpush.msrb.mxu3 %v562_v43  ;;  %v565_v11 = vld [vmem:[%s2571_s6 + $0x28] sm:$0xff]  ;;  %v2160_v13 = vld [vmem:[%s2572_s7] sm:$0xff] }
  0x23   : > { %537 = vmatpush.msra.mxu0 %v512_v14  ;;  %760 = vmatpush.msrb.mxu2 %v582_v39  ;;  %v600_v14 = vperm.slane %v2160_v13, 0 }
  0x25   : > { %538 = vmatpush.msra.mxu0 %v511_v15  ;;  %761 = vmatpush.msrb.mxu2 %v573_v41  ;;  %v606_v15 = vperm.slane %v2160_v13, 6 }
  0x27   : > { %539 = vmatpush.msra.mxu0 %v510_v16  ;;  %762 = vmatpush.msrb.mxu2 %v564_v44 }
  0x29   : > { %540 = vmatpush.msra.mxu0 %v509_v17 }
  0x2b   : > { %541 = vmatpush.msra.mxu0 %v508_v19 }
  0x2d   : > { %542 = vmatpush.msra.mxu0 %v507_v20  ;;  %v601_v20 = vperm.slane %v2160_v13, 1 }
  0x2e   : > { %543 = vmatmul.f32.vlgmr.msra.gmra.mxu0 %v503_v21 }
  0x2f   : > { %817 = vmatpush.msrb.mxu0 %v593_v22 }
  0x31   : > { %818 = vmatpush.msrb.mxu0 %v584_v27 }
  0x33   : > { %819 = vmatpush.msrb.mxu0 %v575_v29 }
  0x35   : > { %820 = vmatpush.msrb.mxu0 %v566_v31 }
  0x36   : > { %546 = vmatmul.f32.gmra.mxu0 %v504_v23 }
  0x3e   : > { %549 = vmatmul.f32.gmra.mxu0 %v505_v24 }
  0x46   : > { %552 = vmatmul.f32.gmra.mxu0 %v506_v25  ;;  %v603_v25 = vperm.slane %v2160_v13, 3 }
  0xab   : > { %v544_v45 = vpop.f32.mrf.mxu0 }
  0xac   : > { %v545_v46 = vadd.f32 %v1779_v42, %v544_v45 }
  0xae   : > { %v2062_v47 = vmax.f32 %v545_v46, 0.0 }
  0xb0   : > { %1676 = vmatmul.msk.f32.vlgmr.msra.gmra.mxu1 %vm618_vm0, %v2062_v47  ;;  %1700 = vmatmul.msk.f32.vlgmr.msrb.gmra.mxu0 %vm618_vm0, %v2062_v47 }
  0xb1   : > { %730 = vmatpush.msra.mxu1 %v590_v48  ;;  %v602_v48 = vperm.slane %v2160_v13, 2 }
  0xb3   : > { %v547_v51 = vpop.f32.mrf.mxu0  ;;  %731 = vmatpush.msra.mxu1 %v581_v49  ;;  %v604_v49 = vperm.slane %v2160_v13, 4 }
  0xb4   : > { %v548_v52 = vadd.f32 %v1779_v42, %v547_v51 }
  0xb5   : > { %732 = vmatpush.msra.mxu1 %v572_v50 }
  0xb6   : > { %v557_v54 = vmax.f32 %v548_v52, 0.0 }
  0xb7   : > { %733 = vmatpush.msra.mxu1 %v563_v53 }
  0xb8   : > { %1677 = vmatmul.msk.f32.vlgmr.msra.gmra.mxu3 %vm618_vm0, %v557_v54  ;;  %1680 = vmatmul.msk.f32.vlgmr.msrb.gmra.mxu1 %vm618_vm0, %v2062_v47 }
  0xb9   : > { %1681 = vmatmul.msk.f32.vlgmr.msra.gmra.mxu2 %vm618_vm0, %v557_v54  ;;  %1701 = vmatmul.msk.f32.gmra.mxu0 %vm618_vm0, %v557_v54 }
  0xba   : > { %788 = vmatpush.msra.mxu3 %v592_v55  ;;  %875 = vmatpush.msra.mxu2 %v595_v56  ;;  %v607_v56 = vperm.slane %v2160_v13, 7 }
  0xbb   : > { %v550_v61 = vpop.f32.mrf.mxu0  ;;  %846 = vmatpush.msrb.mxu1 %v594_v57 }
  0xbc   : > { %v551_v62 = vadd.f32 %v1779_v42, %v550_v61  ;;  %789 = vmatpush.msra.mxu3 %v583_v58  ;;  %876 = vmatpush.msra.mxu2 %v586_v59 }
  0xbd   : > { %847 = vmatpush.msrb.mxu1 %v585_v60 }
  0xbe   : > { %v558_v0 = vmax.f32 %v551_v62, 0.0  ;;  %790 = vmatpush.msra.mxu3 %v574_v2  ;;  %877 = vmatpush.msra.mxu2 %v577_v3 }
  0xbf   : > { %848 = vmatpush.msrb.mxu1 %v576_v63 }
  0xc0   : > { %1678 = vmatmul.msk.f32.gmra.mxu3 %vm618_vm0, %v558_v0  ;;  %1688 = vmatmul.msk.f32.vlgmr.msra.gmra.mxu1 %vm618_vm0, %v2062_v47 }
  0xc1   : > { %1682 = vmatmul.msk.f32.gmra.mxu2 %vm618_vm0, %v558_v0  ;;  %1702 = vmatmul.msk.f32.gmra.mxu0 %vm618_vm0, %v558_v0 }
  0xc2   : > { %849 = vmatpush.msrb.mxu1 %v567_v1  ;;  %791 = vmatpush.msra.mxu3 %v565_v11 }
  0xc3   : > { %v553_v4 = vpop.f32.mrf.mxu0  ;;  %878 = vmatpush.msra.mxu2 %v568_v12 }
  0xc4   : > { %v554_v5 = vadd.f32 %v1779_v42, %v553_v4 }
  0xc6   : > { %v559_v9 = vmax.f32 %v554_v5, 0.0 }
  0xc8   : > { %1679 = vmatmul.msk.f32.gmra.mxu3 %vm618_vm0, %v559_v9  ;;  %1689 = vmatmul.msk.f32.gmra.mxu1 %vm618_vm0, %v557_v54 }
  0xc9   : > { %1683 = vmatmul.msk.f32.gmra.mxu2 %vm618_vm0, %v559_v9  ;;  %1703 = vmatmul.msk.f32.gmra.mxu0 %vm618_vm0, %v559_v9 }
  0xd0   : > { %1684 = vmatmul.msk.f32.vlgmr.msrb.gmra.mxu3 %vm618_vm0, %v2062_v47  ;;  %1690 = vmatmul.msk.f32.gmra.mxu1 %vm618_vm0, %v558_v0 }
  0xd1   : > { %1692 = vmatmul.msk.f32.vlgmr.msrb.gmra.mxu2 %vm618_vm0, %v2062_v47 }
  0xd8   : > { %1685 = vmatmul.msk.f32.gmra.mxu3 %vm618_vm0, %v557_v54  ;;  %1691 = vmatmul.msk.f32.gmra.mxu1 %vm618_vm0, %v559_v9 }
  0xd9   : > { %1693 = vmatmul.msk.f32.gmra.mxu2 %vm618_vm0, %v557_v54 }
  0xe0   : > { %1686 = vmatmul.msk.f32.gmra.mxu3 %vm618_vm0, %v558_v0  ;;  %1704 = vmatmul.msk.f32.vlgmr.msrb.gmra.mxu1 %vm618_vm0, %v2062_v47 }
  0xe1   : > { %1694 = vmatmul.msk.f32.gmra.mxu2 %vm618_vm0, %v558_v0 }
  0xe8   : > { %1687 = vmatmul.msk.f32.gmra.mxu3 %vm618_vm0, %v559_v9  ;;  %1705 = vmatmul.msk.f32.gmra.mxu1 %vm618_vm0, %v557_v54 }
  0xe9   : > { %1695 = vmatmul.msk.f32.gmra.mxu2 %vm618_vm0, %v559_v9 }
  0xf0   : > { %1696 = vmatmul.msk.f32.vlgmr.msra.gmra.mxu3 %vm618_vm0, %v2062_v47  ;;  %1706 = vmatmul.msk.f32.gmra.mxu1 %vm618_vm0, %v558_v0 }
  0xf1   : > { %1708 = vmatmul.msk.f32.vlgmr.msra.gmra.mxu2 %vm618_vm0, %v2062_v47 }
  0xf8   : > { %1697 = vmatmul.msk.f32.gmra.mxu3 %vm618_vm0, %v557_v54  ;;  %1707 = vmatmul.msk.f32.gmra.mxu1 %vm618_vm0, %v559_v9 }
  0xf9   : > { %1709 = vmatmul.msk.f32.gmra.mxu2 %vm618_vm0, %v557_v54 }
 0x100   : > { %1698 = vmatmul.msk.f32.gmra.mxu3 %vm618_vm0, %v558_v0 }
 0x101   : > { %1710 = vmatmul.msk.f32.gmra.mxu2 %vm618_vm0, %v558_v0 }
 0x108   : > { %1699 = vmatmul.msk.f32.gmra.mxu3 %vm618_vm0, %v559_v9 }
 0x109   : > { %1711 = vmatmul.msk.f32.gmra.mxu2 %vm618_vm0, %v559_v9 }
 0x12d   : > { %v648_v16 = vpop.f32.mrf.mxu1  ;;  %v822_v17 = vpop.f32.mrf.mxu0 }
 0x12e   : > { %v649_v18 = vadd.f32 %v648_v16, %v600_v14  ;;  %v823_v19 = vadd.f32 %v822_v17, %v606_v15  ;;  %v605_v16 = vperm.slane %v2160_v13, 5  ;;  %v1780_v17 = vld [vmem:[%s2572_s7 + $0x8] ss:$0 sm:$0xff] }
 0x130   : > { %892 = vst [vmem:[#allocation3 + $0xb0] sm:$0xff] %v649_v18 }
 0x131   : > { %898 = vst [vmem:[#allocation3 + $0x30] sm:$0xff] %v823_v19 }
 0x135   : > { %v677_v21 = vpop.f32.mrf.mxu1 }
 0x136   : > { %v678_v22 = vadd.f32 %v677_v21, %v601_v20  ;;  %v825_v23 = vpop.f32.mrf.mxu0 }
 0x137   : > { %v826_v24 = vadd.f32 %v825_v23, %v606_v15 }
 0x138   : > { %893 = vst [vmem:[#allocation3 + $0xd0] sm:$0xff] %v678_v22 }
 0x139   : > { %907 = vst [vmem:[#allocation3 + $0x78] sm:$0xff] %v826_v24 }
 0x13b   : > { %v651_v26 = vpop.f32.mrf.mxu3 }
 0x13c   : > { %v652_v27 = vadd.f32 %v651_v26, %v600_v14  ;;  %v680_v28 = vpop.f32.mrf.mxu2 }
 0x13d   : > { %v681_v29 = vadd.f32 %v680_v28, %v601_v20  ;;  %v735_v30 = vpop.f32.mrf.mxu1 }
 0x13e   : > { %901 = vst [vmem:[#allocation3 + $0x110] sm:$0xff] %v652_v27  ;;  %v736_v31 = vadd.f32 %v735_v30, %v603_v25  ;;  %v828_v32 = vpop.f32.mrf.mxu0 }
 0x13f   : > { %902 = vst [vmem:[#allocation3 + $0x118] sm:$0xff] %v681_v29  ;;  %v829_v33 = vadd.f32 %v828_v32, %v606_v15 }
 0x140   : > { %895 = vst [vmem:[#allocation3 + $0x48] sm:$0xff] %v736_v31 }
 0x141   : > { %916 = vst [vmem:[#allocation3 + $0xa8] sm:$0xff] %v829_v33 }
 0x143   : > { %v654_v34 = vpop.f32.mrf.mxu3 }
 0x144   : > { %v655_v35 = vadd.f32 %v654_v34, %v600_v14  ;;  %v683_v36 = vpop.f32.mrf.mxu2 }
 0x145   : > { %v684_v37 = vadd.f32 %v683_v36, %v601_v20  ;;  %v738_v38 = vpop.f32.mrf.mxu1 }
 0x146   : > { %910 = vst [vmem:[#allocation3 + $0x90] sm:$0xff] %v655_v35  ;;  %v739_v39 = vadd.f32 %v738_v38, %v603_v25  ;;  %v831_v40 = vpop.f32.mrf.mxu0 }
 0x147   : > { %911 = vst [vmem:[#allocation3 + $0xa0] sm:$0xff] %v684_v37  ;;  %v832_v41 = vadd.f32 %v831_v40, %v606_v15 }
 0x148   : > { %904 = vst [vmem:[#allocation3 + $0xf8] sm:$0xff] %v739_v39 }
 0x149   : > { %925 = vst [vmem:[#allocation3] sm:$0xff] %v832_v41 }
 0x14b   : > { %v657_v42 = vpop.f32.mrf.mxu3 }
 0x14c   : > { %v658_v43 = vadd.f32 %v657_v42, %v600_v14  ;;  %v686_v44 = vpop.f32.mrf.mxu2 }
 0x14d   : > { %v687_v45 = vadd.f32 %v686_v44, %v601_v20  ;;  %v741_v46 = vpop.f32.mrf.mxu1 }
 0x14e   : > { %919 = vst [vmem:[#allocation3 + $0xc0] sm:$0xff] %v658_v43  ;;  %v742_v47 = vadd.f32 %v741_v46, %v603_v25 }
 0x14f   : > { %920 = vst [vmem:[#allocation3 + $0x50] sm:$0xff] %v687_v45 }
 0x150   : > { %913 = vst [vmem:[#allocation3 + $0x58] sm:$0xff] %v742_v47 }
 0x153   : > { %v706_v50 = vpop.f32.mrf.mxu3 }
 0x154   : > { %v707_v51 = vadd.f32 %v706_v50, %v602_v48  ;;  %v764_v52 = vpop.f32.mrf.mxu2 }
 0x155   : > { %v765_v53 = vadd.f32 %v764_v52, %v604_v49  ;;  %v744_v54 = vpop.f32.mrf.mxu1 }
 0x156   : > { %894 = vst [vmem:[#allocation3 + $0x10] sm:$0xff] %v707_v51  ;;  %v745_v55 = vadd.f32 %v744_v54, %v603_v25 }
 0x157   : > { %896 = vst [vmem:[#allocation3 + $0x108] sm:$0xff] %v765_v53 }
 0x158   : > { %922 = vst [vmem:[#allocation3 + $0xb8] sm:$0xff] %v745_v55 }
 0x15b   : > { %v709_v57 = vpop.f32.mrf.mxu3 }
 0x15c   : > { %v710_v58 = vadd.f32 %v709_v57, %v602_v48  ;;  %v767_v59 = vpop.f32.mrf.mxu2 }
 0x15d   : > { %v768_v60 = vadd.f32 %v767_v59, %v604_v49  ;;  %v851_v61 = vpop.f32.mrf.mxu1 }
 0x15e   : > { %903 = vst [vmem:[#allocation3 + $0x98] sm:$0xff] %v710_v58  ;;  %v852_v62 = vadd.f32 %v851_v61, %v607_v56 }
 0x15f   : > { %905 = vst [vmem:[#allocation3 + $0x38] sm:$0xff] %v768_v60 }
 0x160   : > { %899 = vst [vmem:[#allocation3 + $0x18] sm:$0xff] %v852_v62 }
 0x163   : > { %v712_v63 = vpop.f32.mrf.mxu3 }
 0x164   : > { %v713_v0 = vadd.f32 %v712_v63, %v602_v48  ;;  %v770_v1 = vpop.f32.mrf.mxu2 }
 0x165   : > { %v771_v2 = vadd.f32 %v770_v1, %v604_v49  ;;  %v854_v3 = vpop.f32.mrf.mxu1 }
 0x166   : > { %912 = vst [vmem:[#allocation3 + $0x70] sm:$0xff] %v713_v0  ;;  %v855_v4 = vadd.f32 %v854_v3, %v607_v56 }
 0x167   : > { %914 = vst [vmem:[#allocation3 + $0xe0] sm:$0xff] %v771_v2 }
 0x168   : > { %908 = vst [vmem:[#allocation3 + $0x20] sm:$0xff] %v855_v4 }
 0x16b   : > { %v715_v5 = vpop.f32.mrf.mxu3 }
 0x16c   : > { %v716_v9 = vadd.f32 %v715_v5, %v602_v48  ;;  %v773_v11 = vpop.f32.mrf.mxu2 }
 0x16d   : > { %v774_v12 = vadd.f32 %v773_v11, %v604_v49  ;;  %v857_v14 = vpop.f32.mrf.mxu1 }
 0x16e   : > { %921 = vst [vmem:[#allocation3 + $0xf0] sm:$0xff] %v716_v9  ;;  %v858_v15 = vadd.f32 %v857_v14, %v607_v56 }
 0x16f   : > { %923 = vst [vmem:[#allocation3 + $0x28] sm:$0xff] %v774_v12 }
 0x170   : > { %917 = vst [vmem:[#allocation3 + $0x88] sm:$0xff] %v858_v15 }
 0x173   : > { %v793_v18 = vpop.f32.mrf.mxu3 }
 0x174   : > { %v794_v19 = vadd.f32 %v793_v18, %v605_v16  ;;  %v880_v20 = vpop.f32.mrf.mxu2 }
 0x175   : > { %v881_v21 = vadd.f32 %v1780_v17, %v880_v20  ;;  %v860_v22 = vpop.f32.mrf.mxu1 }
 0x176   : > { %897 = vst [vmem:[#allocation3 + $0x68] sm:$0xff] %v794_v19  ;;  %v861_v23 = vadd.f32 %v860_v22, %v607_v56 }
 0x177   : > { %900 = vst [vmem:[#allocation3 + $0x80] sm:$0xff] %v881_v21 }
 0x178   : > { %926 = vst [vmem:[#allocation3 + $0x40] sm:$0xff] %v861_v23 }
 0x17b   : > { %v796_v24 = vpop.f32.mrf.mxu3 }
 0x17c   : > { %v797_v25 = vadd.f32 %v796_v24, %v605_v16  ;;  %v883_v26 = vpop.f32.mrf.mxu2 }
 0x17d   : > { %v884_v27 = vadd.f32 %v1780_v17, %v883_v26 }
 0x17e   : > { %906 = vst [vmem:[#allocation3 + $0x8] sm:$0xff] %v797_v25 }
 0x17f   : > { %909 = vst [vmem:[#allocation3 + $0xc8] sm:$0xff] %v884_v27 }
 0x183   : > { %v799_v13 = vpop.f32.mrf.mxu3 }
 0x184   : > { %v800_v28 = vadd.f32 %v799_v13, %v605_v16  ;;  %v886_v29 = vpop.f32.mrf.mxu2 }
 0x185   : > { %v887_v30 = vadd.f32 %v1780_v17, %v886_v29 }
 0x186   : > { %915 = vst [vmem:[#allocation3 + $0x60] sm:$0xff] %v800_v28 }
 0x187   : > { %918 = vst [vmem:[#allocation3 + $0xd8] sm:$0xff] %v887_v30 }
 0x18b   : > { %v802_v31 = vpop.f32.mrf.mxu3  ;;  %931 = sbr.rel (%p1712_p10) target bundleno = 402 (0x192), region = 56 }
 0x18c   : > { %v803_v32 = vadd.f32 %v802_v31, %v605_v16  ;;  %v889_v33 = vpop.f32.mrf.mxu2 }
 0x18d   : > { %v890_v34 = vadd.f32 %v1780_v17, %v889_v33 }
 0x18e   : > { %924 = vst [vmem:[#allocation3 + $0x100] sm:$0xff] %v803_v32 }
 0x18f   : > { %927 = vst [vmem:[#allocation3 + $0xe8] sm:$0xff] %v890_v34 }
 0x190   : > { %v932_v35 = vld [vmem:[%s468_s13] sm:$0xff] }
 0x191   : > { %933 = vst [vmem:[#allocation2 + $0x8] sm:$0xff] %v932_v35 }
 0x192 PF: > { %p1713_p11 = scmp.ne.s32.totalorder %s1803_s27, 0 }
 0x194   : > { %937 = sbr.rel (%p1713_p11) target bundleno = 411 (0x19b), region = 60 }
 0x199   : > { %v1821_v36 = vmov 0.0  }
 0x19a   : > { %938 = vst [vmem:[#allocation2 + $0x8] sm:$0xff] %v1821_v36 }
 0x19b PF: > { %939 = vst [vmem:[#allocation2 + $0x20] sm:$0xff] %v1934_v6  ;;  %p1714_p12 = scmp.ge.s32.totalorder %s1803_s27, 2 }
 0x19c   : > { %940 = vst [vmem:[#allocation2 + $0x38] sm:$0xff] %v1936_v7 }
 0x19d   : > { %941 = vst [vmem:[#allocation2 + $0x50] sm:$0xff] %v1938_v8  ;;  %946 = sbr.rel (%p1714_p12) target bundleno = 420 (0x1a4), region = 64 }
 0x19e   : > { %942 = vst [vmem:[#allocation2 + $0x68] sm:$0xff] %v1945_v10 }
 0x1a2   : > { %v947_v37 = vld [vmem:[%s1975_s16] sm:$0xff] }
 0x1a3   : > { %948 = vst [vmem:[#allocation2 + $0x80] sm:$0xff] %v947_v37 }
 0x1a4 PF: > { %p1715_p13 = scmp.ne.s32.totalorder %s1803_s27, 2 }
 0x1a6   : > { %952 = sbr.rel (%p1715_p13) target bundleno = 429 (0x1ad), region = 68 }
 0x1ab   : > { %v1822_v38 = vmov 0.0  }
 0x1ac   : > { %953 = vst [vmem:[#allocation2 + $0x80] sm:$0xff] %v1822_v38 }
 0x1ad PF: > { %v2187_v39 = vld [vmem:[#allocation2 + $0x38] sm:$0xff]  ;;  %v2189_v40 = vld [vmem:[#allocation2 + $0x8] sm:$0xff]  ;;  %v954_v41 = vlaneseq  ;;  %s1823_s19 = smov 32   ;;  %v2198_v44 = vld [vmem:[#allocation2 + $0x20] sm:$0xff]  ;;  %vm1180_vm4 = vcmask 1043456   ;;  %s1824_s27 = smov 96  }
 0x1ae   : > { %977 = vrot.lane.b32.xlu1 %v2187_v39, %s1823_s19  ;;  %973 = vrot.lane.b32.xlu0 %v2189_v40, %s1823_s19  ;;  %v2195_v42 = vld [vmem:[#allocation2 + $0x68] sm:$0xff]  ;;  %v1125_v43 = vrot.slane %v2189_v40, 1  ;;  %v1126_v46 = vrot.slane %v2198_v44, 1  ;;  %v1127_v47 = vrot.slane %v2187_v39, 1  ;;  %v2215_v51 = vld [vmem:[#allocation2 + $0x50] sm:$0xff]  ;;  %v2218_v52 = vrot.slane %v2187_v39, 4 }
 0x1af   : > { %981 = vrot.lane.b32.xlu2 %v2195_v42, %s1823_s19  ;;  %v2202_v45 = vshrl.u32 %v954_v41, 7  ;;  %v1161_v53 = vld [vmem:[#allocation2 + $0x8] sm:$0xf0]  ;;  %v1128_v59 = vrot.slane %v2215_v51, 1  ;;  %v1185_v61 = vrot.slane %v2198_v44, 4  ;;  %v1129_v63 = vrot.slane %v2195_v42, 1 }
 0x1b0   : > { %v1184_v0 = vrot.slane %v1161_v53, 4  ;;  %v2258_v12 = vrot.slane %v2215_v51, 4  ;;  %v1169_v22 = vld [vmem:[#allocation2 + $0x68] sm:$0xf] }
 0x1b1   : > { %v2207_v48 = vadd.s32 8, %v2202_v45  ;;  %v1008_v49 = vand.u32 3, %v2202_v45  ;;  %vm1131_vm1 = vcmp.lt.s32.totalorder %v2202_v45, 7  ;;  %v2228_v58 = vadd.s32 16, %v2202_v45 }
 0x1b2   : > { %v1136_v50 = vsel %vm1131_vm1, %v1125_v43, %v1126_v46  ;;  %v1135_v55 = vsel %vm1131_vm1, %v1126_v46, %v1127_v47  ;;  %v2232_v60 = vadd.s32 24, %v2202_v45  ;;  %v2239_v62 = vadd.s32 32, %v2202_v45 }
 0x1b3   : > { %v1015_v54 = vand.u32 3, %v2207_v48  ;;  %vm1138_vm2 = vcmp.eq.s32.totalorder %v1008_v49, 3  ;;  %v2225_v56 = vld [vmem:[#allocation2 + $0x80] sm:$0xff]  ;;  %v1022_v2 = vand.u32 3, %v2228_v58  ;;  %v1134_v3 = vsel %vm1131_vm1, %v1127_v47, %v1128_v59 }
 0x1b4   : > { %v1144_v57 = vsel %vm1138_vm2, 0.0, %v1136_v50  ;;  %v1029_v4 = vand.u32 3, %v2232_v60  ;;  %v1036_v5 = vand.u32 3, %v2239_v62  ;;  %v1130_v9 = vrot.slane %v2225_v56, 1 }
 0x1b5   : > { %vm1139_vm3 = vcmp.eq.s32.totalorder %v1015_v54, 3  ;;  %1150 = vst.msk [vmem:[#allocation2 + $0x10] sm:$0xff] %vm618_vm0, %v1144_v57  ;;  %v1133_v11 = vsel %vm1131_vm1, %v1128_v59, %v1129_v63  ;;  %vm1140_vm5 = vcmp.eq.s32.totalorder %v1022_v2, 3  ;;  %v2271_v18 = vsel %vm1180_vm4, %v1185_v61, %v2218_v52 }
 0x1b6   : > { %979 = vrot.lane.b32.xlu1 %v2215_v51, %s1823_s19  ;;  %975 = vrot.lane.b32.xlu0 %v2198_v44, %s1823_s19  ;;  %v1145_v1 = vsel %vm1139_vm3, 0.0, %v1135_v55  ;;  %v1146_v14 = vsel %vm1140_vm5, 0.0, %v1134_v3  ;;  %v1132_v15 = vsel %vm1131_vm1, %v1129_v63, %v1130_v9  ;;  %vm1141_vm6 = vcmp.eq.s32.totalorder %v1029_v4, 3 }
 0x1b7   : > { %983 = vrot.lane.b32.xlu2 %v2225_v56, %s1823_s19  ;;  %1151 = vst.msk [vmem:[#allocation2 + $0x28] sm:$0xff] %vm618_vm0, %v1145_v1  ;;  %vm1142_vm7 = vcmp.eq.s32.totalorder %v1036_v5, 3  ;;  %v1147_v16 = vsel %vm1141_vm6, 0.0, %v1133_v11  ;;  %v2274_v19 = vsel %vm1180_vm4, %v1184_v0, %v1185_v61  ;;  %v2280_v20 = vsel %vm1180_vm4, %v2218_v52, %v2258_v12 }
 0x1b8   : > { %1152 = vst.msk [vmem:[#allocation2 + $0x40] sm:$0xff] %vm618_vm0, %v1146_v14  ;;  %v1148_v17 = vsel %vm1142_vm7, 0.0, %v1132_v15  ;;  %v1197_v26 = vrot.slane %v1169_v22, 4  ;;  %v960_v37 = vadd.s32 40, %v2202_v45  ;;  %v1137_v41 = vsel %vm1131_vm1, %v1130_v9, %v1125_v43 }
 0x1b9   : > { %1153 = vst.msk [vmem:[#allocation2 + $0x58] sm:$0xff] %vm618_vm0, %v1147_v16  ;;  %vm997_vm9 = vcmp.lt.s32.totalorder %v2202_v45, 1  ;;  %vm1076_vm10 = vcmp.eq.s32.totalorder %v1008_v49, 0  ;;  %vm1078_vm11 = vcmp.eq.s32.totalorder %v1022_v2, 0  ;;  %vm1079_vm12 = vcmp.eq.s32.totalorder %v1029_v4, 0 }
 0x1ba   : > { %1154 = vst.msk [vmem:[#allocation2 + $0x70] sm:$0xff] %vm618_vm0, %v1148_v17  ;;  %v2292_v13 = vsel %vm1180_vm4, %v2258_v12, %v1197_v26  ;;  %v1043_v38 = vand.u32 3, %v960_v37  ;;  %vm1077_vm13 = vcmp.eq.s32.totalorder %v1015_v54, 0  ;;  %vm1080_vm15 = vcmp.eq.s32.totalorder %v1036_v5, 0  ;;  %v1398_v17 = vld [vmem:[#allocation2 + $0x20] sm:$0xf0] }
 0x1bb   : > { %vm1282_vm1 = vcmask 785408   ;;  %vm1112_vm2 = vcmask 1048320  }
 0x1bc   : > { %v1247_v21 = vld [vmem:[#allocation2 + $0x10] sm:$0xf0]  ;;  %vm1143_vm8 = vcmp.eq.s32.totalorder %v1043_v38, 3  ;;  %vm1081_vm14 = vcmp.eq.s32.totalorder %v1043_v38, 0 }
 0x1bd   : > { %v1257_v24 = vrot.slane %v1247_v21, 4  ;;  %v1149_v46 = vsel %vm1143_vm8, 0.0, %v1137_v41 }
 0x1be   : > { %1205 = vrot.lane.b32.xlu0 %v2271_v18, %s1823_s19  ;;  %1201 = vrot.lane.b32.xlu1 %v2274_v19, %s1823_s19  ;;  %v1248_v23 = vld [vmem:[#allocation2 + $0x28] sm:$0xff]  ;;  %1155 = vst.msk [vmem:[#allocation2 + $0x88] sm:$0xff] %vm618_vm0, %v1149_v46 }
 0x1bf   : > { %1209 = vrot.lane.b32.xlu2 %v2280_v20, %s1823_s19  ;;  %v1258_v25 = vrot.slane %v1248_v23, 4  ;;  %v1249_v28 = vld [vmem:[#allocation2 + $0x40] sm:$0xff]  ;;  %v1458_v38 = vld [vmem:[#allocation2 + $0x28] sm:$0xf0] }
 0x1c0   : > { %v2299_v29 = vrot.slane %v1249_v28, 4  ;;  %v2303_v31 = vld [vmem:[#allocation2 + $0x58] sm:$0xff]  ;;  %v1462_v46 = vrot.slane %v1458_v38, 4 }
 0x1c1   : > { %v1259_v27 = vsel %vm1180_vm4, %v1257_v24, %v1258_v25  ;;  %v1251_v32 = vld [vmem:[#allocation2 + $0x70] sm:$0xf]  ;;  %v2311_v33 = vrot.slane %v2303_v31, 4 }
 0x1c2   : > { %v1261_v30 = vsel %vm1180_vm4, %v1258_v25, %v2299_v29  ;;  %v1264_v34 = vrot.slane %v1251_v32, 4 }
 0x1c3   : > { %v1263_v36 = vsel %vm1180_vm4, %v2299_v29, %v2311_v33 }
 0x1c4   : > { %v1265_v35 = vsel %vm1180_vm4, %v2311_v33, %v1264_v34 }
 0x1c6   : > { %1268 = vrot.lane.b32.xlu0 %v1259_v27, %s1824_s27  ;;  %1213 = vrot.lane.b32.xlu1 %v2292_v13, %s1823_s19 }
 0x1c7   : > { %1266 = vrot.lane.b32.xlu2 %v2274_v19, %s1824_s27 }
 0x1ce   : > { %1274 = vrot.lane.b32.xlu0 %v2280_v20, %s1824_s27  ;;  %1270 = vrot.lane.b32.xlu1 %v2271_v18, %s1824_s27 }
 0x1cf   : > { %1272 = vrot.lane.b32.xlu2 %v1261_v30, %s1824_s27 }
 0x1d6   : > { %1280 = vrot.lane.b32.xlu0 %v1265_v35, %s1824_s27  ;;  %1276 = vrot.lane.b32.xlu1 %v1263_v36, %s1824_s27 }
 0x1d7   : > { %1278 = vrot.lane.b32.xlu2 %v2292_v13, %s1824_s27 }
 0x1de   : > { %1321 = vrot.lane.b32.xlu0 %v2215_v51, %s1823_s19  ;;  %1317 = vrot.lane.b32.xlu1 %v2187_v39, %s1823_s19 }
 0x1df   : > { %1313 = vrot.lane.b32.xlu2 %v2198_v44, %s1823_s19 }
 0x1e6   : > { %1357 = vrot.lane.b32.xlu0 %v2198_v44, %s1824_s27  ;;  %1359 = vrot.lane.b32.xlu1 %v1248_v23, %s1824_s27  ;;  %v1407_v23 = vrot.slane %v1398_v17, 4 }
 0x1e7   : > { %1325 = vrot.lane.b32.xlu2 %v2195_v42, %s1823_s19 }
 0x1e8   : > { %v2388_v62 = vsel %vm1180_vm4, %v1407_v23, %v2218_v52 }
 0x1ee   : > { %1363 = vrot.lane.b32.xlu0 %v1249_v28, %s1824_s27  ;;  %1365 = vrot.lane.b32.xlu1 %v2215_v51, %s1824_s27 }
 0x1ef   : > { %1361 = vrot.lane.b32.xlu2 %v2187_v39, %s1824_s27 }
 0x209   : > { %v982_v47 = vpop.permute.xlu2 %981 }
 0x20a   : > { %v995_v15 = vrot.slane %v982_v47, 7 }
 0x211   : > { %v984_v50 = vpop.permute.xlu2 %983 }
 0x212   : > { %v996_v53 = vrot.slane %v984_v50, 7  ;;  %v1463_v50 = vsel %vm1180_vm4, %v1462_v46, %v2299_v29 }
 0x214   : > { %v998_v60 = vsel %vm997_vm9, %v995_v15, %v996_v53 }
 0x215   : > { %v1087_v21 = vsel %vm1081_vm14, 0.0, %v998_v60 }
 0x219   : > { %v2356_v49 = vpop.permute.xlu2 %1209 }
 0x220   : > { %v978_v55 = vpop.permute.xlu1 %977  ;;  %v974_v56 = vpop.permute.xlu0 %973 }
 0x221   : > { %v991_v57 = vrot.slane %v974_v56, 7  ;;  %v993_v43 = vrot.slane %v978_v55, 7  ;;  %v1267_v16 = vpop.permute.xlu2 %1266 }
 0x223   : > { %v1003_v40 = vsel %vm997_vm9, %v996_v53, %v991_v57 }
 0x224   : > { %v1082_v59 = vsel %vm1076_vm10, 0.0, %v1003_v40  ;;  %v2417_v40 = vld [vmem:[#allocation2 + $0x70] sm:$0xff] }
 0x225   : > { %1094 = vrot.lane.b32.xlu0 %v1082_v59, %s1824_s27 }
 0x228   : > { %v980_v61 = vpop.permute.xlu1 %979  ;;  %v976_v63 = vpop.permute.xlu0 %975 }
 0x229   : > { %v994_v0 = vrot.slane %v980_v61, 7  ;;  %v992_v1 = vrot.slane %v976_v63, 7  ;;  %v1273_v5 = vpop.permute.xlu2 %1272  ;;  %v1411_v61 = vrot.slane %v2195_v42, 4 }
 0x22b   : > { %v1001_v3 = vsel %vm997_vm9, %v992_v1, %v993_v43  ;;  %v1000_v9 = vsel %vm997_vm9, %v993_v43, %v994_v0  ;;  %v1002_v58 = vsel %vm997_vm9, %v991_v57, %v992_v1  ;;  %v999_v4 = vsel %vm997_vm9, %v994_v0, %v995_v15  ;;  %v1400_v43 = vld [vmem:[#allocation2 + $0x80] sm:$0xf] }
 0x22c   : > { %v1084_v2 = vsel %vm1078_vm11, 0.0, %v1001_v3  ;;  %v1085_v11 = vsel %vm1079_vm12, 0.0, %v1000_v9  ;;  %v1083_v14 = vsel %vm1077_vm13, 0.0, %v1002_v58  ;;  %v1086_v22 = vsel %vm1080_vm15, 0.0, %v999_v4 }
 0x22d   : > { %1098 = vrot.lane.b32.xlu2 %v1084_v2, %s1824_s27  ;;  %1100 = vrot.lane.b32.xlu0 %v1085_v11, %s1824_s27  ;;  %v1415_v29 = vrot.slane %v1400_v43, 4  ;;  %v2427_v63 = vsel %vm1180_vm4, %v2258_v12, %v1411_v61 }
 0x22e   : > { %1096 = vrot.lane.b32.xlu1 %v1083_v14, %s1824_s27 }
 0x22f   : > { %v2430_v0 = vsel %vm1180_vm4, %v1411_v61, %v1415_v29  ;;  %v1459_v61 = vld [vmem:[#allocation2 + $0x88] sm:$0xf] }
 0x230   : > { %v2367_v48 = vpop.permute.xlu0 %1205  ;;  %v2369_v54 = vpop.permute.xlu1 %1201 }
 0x231   : > { %v1279_v30 = vpop.permute.xlu2 %1278 }
 0x235   : > { %1104 = vrot.lane.b32.xlu2 %v1087_v21, %s1824_s27  ;;  %1369 = vrot.lane.b32.xlu0 %v2195_v42, %s1824_s27 }
 0x236   : > { %1102 = vrot.lane.b32.xlu1 %v1086_v22, %s1824_s27 }
 0x238   : > { %v1269_v24 = vpop.permute.xlu0 %1268  ;;  %v2381_v25 = vpop.permute.xlu1 %1213 }
 0x239   : > { %v2384_v45 = vsel %vm1282_vm1, %v1267_v16, %v1269_v24  ;;  %v2403_v36 = vpop.permute.xlu2 %1313 }
 0x23d   : > { %1367 = vrot.lane.b32.xlu2 %v2303_v31, %s1824_s27  ;;  %1419 = vrot.lane.b32.xlu0 %v2388_v62, %s1823_s19 }
 0x23e   : > { %1371 = vrot.lane.b32.xlu1 %v2417_v40, %s1824_s27 }
 0x240   : > { %v1275_v26 = vpop.permute.xlu0 %1274  ;;  %v1271_v27 = vpop.permute.xlu1 %1270 }
 0x241   : > { %v2395_v28 = vsel %vm1282_vm1, %v1271_v27, %v1273_v5  ;;  %v2409_v41 = vpop.permute.xlu2 %1325 }
 0x245   : > { %1470 = vrot.lane.b32.xlu0 %v1463_v50, %s1824_s27  ;;  %1423 = vrot.lane.b32.xlu2 %v2427_v63, %s1823_s19 }
 0x246   : > { %1427 = vrot.lane.b32.xlu1 %v2430_v0, %s1823_s19 }
 0x248   : > { %v1281_v32 = vpop.permute.xlu0 %1280  ;;  %v1277_v34 = vpop.permute.xlu1 %1276 }
 0x249   : > { %v2398_v35 = vsel %vm1282_vm1, %v1279_v30, %v1281_v32  ;;  %v2401_v52 = vsel %vm1282_vm1, %v1275_v26, %v1277_v34  ;;  %v1362_v56 = vpop.permute.xlu2 %1361 }
 0x24d   : > { %1468 = vrot.lane.b32.xlu2 %v2388_v62, %s1824_s27 }
 0x24e   : > { %1472 = vrot.lane.b32.xlu1 %v2427_v63, %s1824_s27 }
 0x250   : > { %v2405_v31 = vpop.permute.xlu0 %1321  ;;  %v2407_v37 = vpop.permute.xlu1 %1317 }
 0x258   : > { %v1358_v47 = vpop.permute.xlu0 %1357  ;;  %v1360_v53 = vpop.permute.xlu1 %1359 }
 0x259   : > { %v2415_v55 = vsel %vm1282_vm1, %v1358_v47, %v1360_v53  ;;  %v1464_v53 = vrot.slane %v2417_v40, 4 }
 0x25b   : > { %v1465_v43 = vsel %vm1180_vm4, %v2311_v33, %v1464_v53 }
 0x260   : > { %v1364_v57 = vpop.permute.xlu0 %1363  ;;  %v2443_v9 = vpop.permute.xlu1 %1365 }
 0x261   : > { %v2420_v59 = vsel %vm1282_vm1, %v1362_v56, %v1364_v57 }
 0x287   : > { %v1099_v1 = vpop.permute.xlu2 %1098 }
 0x288   : > { %1115 = vst.msk [vmem:[#allocation2 + $0x30] sm:$0xff] %vm1112_vm2, %v1099_v1  ;;  %v1466_v1 = vrot.slane %v1459_v61, 4  ;;  %v1227_v61 = vld [vmem:[#allocation3 + $0xd0] sm:$0xff] }
 0x28a   : > { %v1467_v40 = vsel %vm1180_vm4, %v1464_v53, %v1466_v1 }
 0x28f   : > { %v1105_v12 = vpop.permute.xlu2 %1104  ;;  %v1164_v3 = vld [vmem:[#allocation2 + $0x30] sm:$0xff] }
 0x290   : > { %1118 = vst.msk [vmem:[#allocation2 + $0x78] sm:$0xff] %vm1112_vm2, %v1105_v12  ;;  %1315 = vrot.lane.b32.xlu0 %v1164_v3, %s1823_s19  ;;  %v1187_v22 = vrot.slane %v1164_v3, 4 }
 0x297   : > { %v1095_v58 = vpop.permute.xlu0 %1094  ;;  %v1399_v38 = vld [vmem:[#allocation2 + $0x78] sm:$0xf]  ;;  %v2474_v12 = vpop.permute.xlu2 %1367 }
 0x298   : > { %1113 = vst.msk [vmem:[#allocation2] sm:$0xff] %vm1112_vm2, %v1095_v58  ;;  %v1413_v56 = vrot.slane %v1399_v38, 4  ;;  %v1352_v38 = vld [vmem:[#allocation3 + $0x8] sm:$0xff] }
 0x29f   : > { %v1101_v2 = vpop.permute.xlu0 %1100  ;;  %v1160_v14 = vld [vmem:[#allocation2] sm:$0xf0]  ;;  %v2478_v33 = vpop.permute.xlu2 %1423 }
 0x2a0   : > { %1116 = vst.msk [vmem:[#allocation2 + $0x48] sm:$0xff] %vm1112_vm2, %v1101_v2  ;;  %v1097_v11 = vpop.permute.xlu1 %1096  ;;  %v1181_v17 = vrot.slane %v1160_v14, 4 }
 0x2a1   : > { %1114 = vst.msk [vmem:[#allocation2 + $0x18] sm:$0xff] %vm1112_vm2, %v1097_v11 }
 0x2a7   : > { %v1166_v15 = vld [vmem:[#allocation2 + $0x48] sm:$0xff]  ;;  %v2476_v3 = vpop.permute.xlu0 %1369  ;;  %v1469_v2 = vpop.permute.xlu2 %1468 }
 0x2a8   : > { %v1103_v60 = vpop.permute.xlu1 %1102  ;;  %1319 = vrot.lane.b32.xlu2 %v1166_v15, %s1823_s19  ;;  %v1162_v4 = vld [vmem:[#allocation2 + $0x18] sm:$0xff]  ;;  %v1191_v27 = vrot.slane %v1166_v15, 4 }
 0x2a9   : > { %1117 = vst.msk [vmem:[#allocation2 + $0x60] sm:$0xff] %vm1112_vm2, %v1103_v60  ;;  %1311 = vrot.lane.b32.xlu1 %v1162_v4, %s1823_s19  ;;  %v1182_v16 = vrot.slane %v1162_v4, 4  ;;  %v1397_v26 = vld [vmem:[#allocation2 + $0x18] sm:$0xf0]  ;;  %v1228_v4 = vld [vmem:[#allocation3 + $0x118] sm:$0xff] }
 0x2aa   : > { %v1405_v34 = vrot.slane %v1397_v26, 4  ;;  %v1192_v50 = vsel %vm1180_vm4, %v1187_v22, %v1191_v27 }
 0x2ab   : > { %v1183_v21 = vsel %vm1180_vm4, %v1181_v17, %v1182_v16  ;;  %v1188_v23 = vsel %vm1180_vm4, %v1182_v16, %v1187_v22  ;;  %v1304_v16 = vld [vmem:[#allocation3 + $0xf8] sm:$0xff] }
 0x2ac   : > { %1199 = vrot.lane.b32.xlu0 %v1183_v21, %s1823_s19  ;;  %v1406_v47 = vsel %vm1180_vm4, %v1405_v34, %v1187_v22  ;;  %v1340_v17 = vld [vmem:[#allocation3 + $0x38] sm:$0xff] }
 0x2af   : > { %v1420_v58 = vpop.permute.xlu0 %1419 }
 0x2b0   : > { %1203 = vrot.lane.b32.xlu2 %v1188_v23, %s1823_s19  ;;  %v1307_v24 = vld [vmem:[#allocation2 + $0x60] sm:$0xff]  ;;  %v2480_v14 = vpop.permute.xlu1 %1371 }
 0x2b1   : > { %v1168_v5 = vld [vmem:[#allocation2 + $0x60] sm:$0xf]  ;;  %1323 = vrot.lane.b32.xlu1 %v1307_v24, %s1823_s19  ;;  %v1409_v46 = vrot.slane %v1307_v24, 4  ;;  %v1236_v24 = vmul.f32 %v1228_v4, %v2271_v18 }
 0x2b2   : > { %v1195_v30 = vrot.slane %v1168_v5, 4  ;;  %v1157_v23 = vld [vmem:[#allocation3 + $0x110] sm:$0xff]  ;;  %v1344_v5 = vmul.f32 %v1340_v17, %v2187_v39 }
 0x2b3   : > { %v1414_v57 = vsel %vm1180_vm4, %v1409_v46, %v1413_v56  ;;  %v1410_v29 = vsel %vm1180_vm4, %v1191_v27, %v1409_v46  ;;  %v1156_v4 = vld [vmem:[#allocation3 + $0xb0] sm:$0xff] }
 0x2b4   : > { %v1196_v32 = vsel %vm1180_vm4, %v1191_v27, %v1195_v30  ;;  %v1244_v30 = vld [vmem:[#allocation3 + $0x98] sm:$0xff] }
 0x2b5   : > { %1211 = vrot.lane.b32.xlu0 %v1196_v32, %s1823_s19  ;;  %v1292_v46 = vmul.f32 %v2395_v28, %v1244_v30 }
 0x2b7   : > { %v1471_v11 = vpop.permute.xlu0 %1470 }
 0x2b8   : > { %1417 = vrot.lane.b32.xlu2 %v1406_v47, %s1823_s19  ;;  %v2486_v22 = vpop.permute.xlu1 %1427 }
 0x2b9   : > { %1207 = vrot.lane.b32.xlu1 %v1192_v50, %s1823_s19 }
 0x2bd   : > { %1425 = vrot.lane.b32.xlu0 %v1414_v57, %s1823_s19 }
 0x2c0   : > { %1474 = vrot.lane.b32.xlu2 %v1465_v43, %s1824_s27  ;;  %v2494_v56 = vpop.permute.xlu1 %1472 }
 0x2c1   : > { %1421 = vrot.lane.b32.xlu1 %v1410_v29, %s1823_s19  ;;  %v1303_v29 = vld [vmem:[#allocation3 + $0x48] sm:$0xff] }
 0x2c5   : > { %1476 = vrot.lane.b32.xlu0 %v2430_v0, %s1824_s27 }
 0x2c9   : > { %1478 = vrot.lane.b32.xlu1 %v1467_v40, %s1824_s27  ;;  %v1439_v40 = vld [vmem:[#allocation3 + $0x18] sm:$0xff] }
 0x302   : > { %v2482_v15 = vpop.permute.xlu2 %1319  ;;  %v1316_v60 = vpop.permute.xlu0 %1315 }
 0x303   : > { %v1328_v21 = vsel %vm618_vm0, %v1316_v60, %v2407_v37  ;;  %v1382_v37 = vmul.f32 %v2420_v59, %v1352_v38  ;;  %v1393_v60 = vld [vmem:[#allocation3 + $0x30] sm:$0xff]  ;;  %v1454_v38 = vld [vmem:[#allocation3 + $0x80] sm:$0xff] }
 0x304   : > { %v1336_v26 = vmul.f32 %v1328_v21, %v1304_v16  ;;  %v1235_v16 = vmul.f32 %v1227_v61, %v2274_v19  ;;  %v1480_v19 = vsel %vm1282_vm1, %v1469_v2, %v1471_v11 }
 0x306   : > { %v1348_v47 = vadd.f32 %v1344_v5, %v1336_v26  ;;  %v1446_v5 = vmul.f32 %v1439_v40, %v2388_v62  ;;  %v1486_v62 = vmul.f32 %v1480_v19, %v1454_v38 }
 0x308   : > { %v1386_v18 = vadd.f32 %v1382_v37, %v1348_v47  ;;  %v1159_v37 = vld [vmem:[#allocation3 + $0xc0] sm:$0xff] }
 0x30a   : > { %v1204_v27 = vpop.permute.xlu2 %1203 }
 0x30b   : > { %v1216_v32 = vsel %vm618_vm0, %v1204_v27, %v2367_v48  ;;  %v1339_v48 = vld [vmem:[#allocation3 + $0x108] sm:$0xff] }
 0x30c   : > { %v1224_v34 = vmul.f32 %v1216_v32, %v1157_v23  ;;  %v1343_v17 = vmul.f32 %v1339_v48, %v2198_v44  ;;  %v1243_v23 = vld [vmem:[#allocation3 + $0x10] sm:$0xff] }
 0x30d   : > { %v1291_v30 = vmul.f32 %v2384_v45, %v1243_v23  ;;  %v1246_v45 = vld [vmem:[#allocation3 + $0xf0] sm:$0xff] }
 0x30e   : > { %v1240_v50 = vadd.f32 %v1236_v24, %v1224_v34  ;;  %v1230_v34 = vld [vmem:[#allocation3 + $0x50] sm:$0xff] }
 0x310   : > { %v1296_v53 = vadd.f32 %v1292_v46, %v1240_v50 }
 0x312   : > { %v1300_v39 = vadd.f32 %v1296_v53, %v1936_v7  ;;  %v1418_v43 = vpop.permute.xlu2 %1417 }
 0x313   : > { %v1429_v59 = vsel %vm618_vm0, %v1418_v43, %v1420_v58  ;;  %v1305_v43 = vld [vmem:[#allocation3 + $0x58] sm:$0xff] }
 0x314   : > { %v2497_v57 = vadd.f32 %v1386_v18, %v1300_v39  ;;  %v1435_v26 = vmul.f32 %v1429_v59, %v1393_v60  ;;  %v1158_v60 = vld [vmem:[#allocation3 + $0x90] sm:$0xff]  ;;  %v1394_v59 = vld [vmem:[#allocation3 + $0x78] sm:$0xff] }
 0x316   : > { %v1450_v47 = vadd.f32 %v1446_v5, %v1435_v26  ;;  %v1353_v26 = vld [vmem:[#allocation3 + $0x60] sm:$0xff] }
 0x318   : > { %v1490_v2 = vadd.f32 %v1486_v62, %v1450_v47  ;;  %v1342_v47 = vld [vmem:[#allocation3 + $0x28] sm:$0xff] }
 0x31b   : > { %v1312_v1 = vpop.permute.xlu1 %1311 }
 0x31c   : > { %v1327_v28 = vsel %vm618_vm0, %v1312_v1, %v2403_v36  ;;  %v1351_v36 = vld [vmem:[#allocation3 + $0x68] sm:$0xff]  ;;  %v1440_v1 = vld [vmem:[#allocation3 + $0x20] sm:$0xff] }
 0x31d   : > { %v1335_v7 = vmul.f32 %v1327_v28, %v1303_v29  ;;  %v1381_v46 = vmul.f32 %v2415_v55, %v1351_v36  ;;  %v1341_v29 = vld [vmem:[#allocation3 + $0xe0] sm:$0xff]  ;;  %v1329_v55 = vsel %vm618_vm0, %v2482_v15, %v2405_v31  ;;  %v1294_v28 = vmul.f32 %v2398_v35, %v1246_v45 }
 0x31e   : > { %v1200_v21 = vpop.permute.xlu0 %1199  ;;  %v1447_v31 = vmul.f32 %v1440_v1, %v2280_v20  ;;  %v1346_v45 = vmul.f32 %v1342_v47, %v2195_v42 }
 0x31f   : > { %v1215_v24 = vsel %vm618_vm0, %v1200_v21, %v2369_v54  ;;  %v1347_v32 = vadd.f32 %v1343_v17, %v1335_v7  ;;  %v1238_v54 = vmul.f32 %v1230_v34, %v2292_v13  ;;  %v1229_v13 = vld [vmem:[#allocation3 + $0xa0] sm:$0xff]  ;;  %v1455_v7 = vld [vmem:[#allocation3 + $0xc8] sm:$0xff]  ;;  %v1475_v34 = vpop.permute.xlu2 %1474 }
 0x320   : > { %v1223_v27 = vmul.f32 %v1215_v24, %v1156_v4  ;;  %v1245_v4 = vld [vmem:[#allocation3 + $0x70] sm:$0xff]  ;;  %v1237_v17 = vmul.f32 %v1229_v13, %v2280_v20  ;;  %v1457_v13 = vld [vmem:[#allocation3 + $0xe8] sm:$0xff] }
 0x321   : > { %v1385_v53 = vadd.f32 %v1381_v46, %v1347_v32  ;;  %v1293_v5 = vmul.f32 %v2401_v52, %v1245_v4  ;;  %v1441_v32 = vld [vmem:[#allocation3 + $0x88] sm:$0xff]  ;;  %v1306_v46 = vld [vmem:[#allocation3 + $0xb8] sm:$0xff] }
 0x322   : > { %v1239_v58 = vadd.f32 %v1235_v16, %v1223_v27  ;;  %v1337_v16 = vmul.f32 %v1329_v55, %v1305_v43  ;;  %v1487_v27 = vmul.f32 %v1455_v7, %v2401_v52  ;;  %v1354_v55 = vld [vmem:[#allocation3 + $0x100] sm:$0xff] }
 0x323   : > { %v1324_v44 = vpop.permute.xlu1 %1323 }
 0x324   : > { %v1295_v50 = vadd.f32 %v1291_v30, %v1239_v58 }
 0x326   : > { %v1299_v18 = vadd.f32 %v1295_v50, %v1934_v6  ;;  %v1330_v50 = vsel %vm618_vm0, %v1324_v44, %v2409_v41 }
 0x327   : > { %v1212_v39 = vpop.permute.xlu0 %1211  ;;  %v1338_v43 = vmul.f32 %v1330_v50, %v1306_v46 }
 0x328   : > { %v1218_v61 = vsel %vm618_vm0, %v1212_v39, %v2381_v25  ;;  %v1389_v11 = vadd.f32 %v1385_v53, %v1299_v18  ;;  %v1345_v25 = vmul.f32 %v1341_v29, %v2215_v51  ;;  %v1375_v51 = vsel %vm1282_vm1, %v2443_v9, %v2474_v12  ;;  %v1456_v53 = vld [vmem:[#allocation3 + $0xd8] sm:$0xff] }
 0x329   : > { %v1226_v48 = vmul.f32 %v1218_v61, %v1159_v37  ;;  %v1383_v58 = vmul.f32 %v1375_v51, %v1353_v26  ;;  %v1395_v37 = vld [vmem:[#allocation3 + $0xa8] sm:$0xff]  ;;  %v1448_v9 = vmul.f32 %v1441_v32, %v2427_v63  ;;  %v1481_v18 = vsel %vm1282_vm1, %v2494_v56, %v1475_v34  ;;  %v1442_v63 = vld [vmem:[#allocation3 + $0x40] sm:$0xff] }
 0x32a   : > { %v1494_v6 = vadd.f32 %v1490_v2, %v1389_v11  ;;  %v1349_v36 = vadd.f32 %v1345_v25, %v1337_v16  ;;  %v1396_v61 = vld [vmem:[#allocation3] sm:$0xff]  ;;  %v1376_v56 = vsel %vm1282_vm1, %v2476_v3, %v2480_v14  ;;  %v1350_v42 = vadd.f32 %v1346_v45, %v1338_v43 }
 0x32b   : > { %v1242_v40 = vadd.f32 %v1238_v54, %v1226_v48  ;;  %v1208_v15 = vpop.permute.xlu1 %1207  ;;  %v1384_v1 = vmul.f32 %v1376_v56, %v1354_v55 }
 0x32c   : > { %1498 = vst [vmem:[%s1957_s15] sm:$0xff] %v1494_v6  ;;  %v1217_v23 = vsel %vm618_vm0, %v1208_v15, %v2356_v49  ;;  %v1387_v12 = vadd.f32 %v1383_v58, %v1349_v36 }
 0x32d   : > { %v1298_v21 = vadd.f32 %v1294_v28, %v1242_v40  ;;  %v1225_v35 = vmul.f32 %v1217_v23, %v1158_v60  ;;  %v1436_v24 = vmul.f32 %v1394_v59, %v1217_v23  ;;  %v1388_v60 = vadd.f32 %v1384_v1, %v1350_v42 }
 0x32f   : > { %v1241_v20 = vadd.f32 %v1237_v17, %v1225_v35  ;;  %v1451_v30 = vadd.f32 %v1447_v31, %v1436_v24  ;;  %v1426_v49 = vpop.permute.xlu0 %1425  ;;  %v1302_v28 = vadd.f32 %v1298_v21, %v1945_v10 }
 0x331   : > { %v1297_v38 = vadd.f32 %v1293_v5, %v1241_v20  ;;  %v1491_v19 = vadd.f32 %v1487_v27, %v1451_v30  ;;  %v1392_v3 = vadd.f32 %v1388_v60, %v1302_v28 }
 0x333   : > { %v1301_v52 = vadd.f32 %v1297_v38, %v1938_v8  ;;  %v1495_v54 = vadd.f32 %v1491_v19, %v2497_v57  ;;  %v1422_v62 = vpop.permute.xlu1 %1421  ;;  %v1431_v8 = vsel %vm618_vm0, %v1426_v49, %v2486_v22  ;;  %v1488_v57 = vmul.f32 %v1481_v18, %v1456_v53 }
 0x334   : > { %v1430_v39 = vsel %vm618_vm0, %v1422_v62, %v2478_v33  ;;  %v1449_v33 = vmul.f32 %v1442_v63, %v2430_v0  ;;  %v1438_v2 = vmul.f32 %v1431_v8, %v1396_v61 }
 0x335   : > { %v1391_v41 = vadd.f32 %v1387_v12, %v1301_v52  ;;  %1499 = vst [vmem:[%s1957_s15 + $0x8] sm:$0xff] %v1495_v54  ;;  %v1437_v44 = vmul.f32 %v1430_v39, %v1395_v37 }
 0x336   : > { %v1453_v59 = vadd.f32 %v1449_v33, %v1438_v2 }
 0x337   : > { %v1452_v29 = vadd.f32 %v1448_v9, %v1437_v44  ;;  %v1477_v48 = vpop.permute.xlu0 %1476 }
 0x339   : > { %v1492_v11 = vadd.f32 %v1488_v57, %v1452_v29 }
 0x33b   : > { %v1496_v22 = vadd.f32 %v1492_v11, %v1391_v41  ;;  %v1479_v6 = vpop.permute.xlu1 %1478 }
 0x33c   : > { %v1482_v40 = vsel %vm1282_vm1, %v1477_v48, %v1479_v6 }
 0x33d   : > { %1500 = vst [vmem:[%s1957_s15 + $0x10] sm:$0xff] %v1496_v22  ;;  %v1489_v4 = vmul.f32 %v1482_v40, %v1457_v13 }
 0x33f   : > { %v1493_v14 = vadd.f32 %v1489_v4, %v1453_v59 }
 0x341   : > { %v1497_v0 = vadd.f32 %v1493_v14, %v1392_v3 }
 0x343   : > { %1501 = vst [vmem:[%s1957_s15 + $0x18] sm:$0xff] %v1497_v0 }
 0x344 PF: > { %s18_s9 = sadd.s32 1, %s1819_s9   ;;  %s2577_s27 = smov %s1811_s29 }
 0x345   : > { %p15_p0 = scmp.ge.s32.totalorder %s18_s9, 8   ;;  %s2578_s28 = smov %s1815_s30 }
 0x346   : > { %s2579_s29 = smov %s2582_s10  ;;  %s2580_s30 = smov %s2586_s11 }
 0x347   :  { %17 = sbr.rel (!%p15_p0) target bundleno = 3 (0x3), region = 107 }

</bundles_post_ra>
